<compile_context>
chip_gen: v7x
topology: tpu7x:2x2x1
jax: 0.10.0
libtpu: 0.0.40
codegen_flags: <defaults>
</compile_context>

<pallas_src>
import jax
import jax.numpy as jnp
from jax.experimental import pallas as pl
from jax.experimental.pallas import tpu as pltpu


def _bottleneck_kernel(x_ref, w1_ref, w2_ref, w3_ref,
                       b1_ref, b2_ref, b3_ref,
                       out_ref, pad_ref):
    H, W, Cin = x_ref.shape
    P = w1_ref.shape[1]
    Cout = w3_ref.shape[1]

    # Load x once; reused both as conv1 input and as the identity residual.
    x = x_ref[...].reshape(H * W, Cin)                      # f32

    # ---- conv1 (1x1, BN scale folded into w1) + bias + relu ----
    h1 = jnp.dot(x.astype(jnp.bfloat16), w1_ref[...],
                 preferred_element_type=jnp.float32)
    h1 = jnp.maximum(h1 + b1_ref[...], 0.0)                 # (H*W, P) f32

    # ---- zero only the 1-pixel halo; interior is fully overwritten below ----
    zrow = jnp.zeros((1, W + 2, P), pad_ref.dtype)
    zcol = jnp.zeros((H + 2, 1, P), pad_ref.dtype)
    pad_ref[0:1, :, :] = zrow
    pad_ref[H + 1:H + 2, :, :] = zrow
    pad_ref[:, 0:1, :] = zcol
    pad_ref[:, W + 1:W + 2, :] = zcol
    pad_ref[1:H + 1, 1:W + 1, :] = h1.reshape(H, W, P).astype(pad_ref.dtype)

    # ---- conv2 (3x3, padding=1, stride=1) as a single im2col matmul ----
    # Column order is (kh, kw, cin), matching w2 reshaped to (9*P, P).
    patches = []
    for kh in range(3):
        for kw in range(3):
            patches.append(pad_ref[kh:kh + H, kw:kw + W, :].reshape(H * W, P))
    col = jnp.concatenate(patches, axis=-1)                 # (H*W, 9P) f32
    h2 = jnp.dot(col.astype(jnp.bfloat16), w2_ref[...],
                 preferred_element_type=jnp.float32)
    h2 = jnp.maximum(h2 + b2_ref[...], 0.0)                 # (H*W, P) f32

    # ---- conv3 (1x1, BN scale folded) + bias + identity residual + relu ----
    h3 = jnp.dot(h2.astype(jnp.bfloat16), w3_ref[...],
                 preferred_element_type=jnp.float32)
    out = jnp.maximum(h3 + b3_ref[...] + x, 0.0)            # (H*W, Cout) f32
    out_ref[...] = out.reshape(H, W, Cout).astype(out_ref.dtype)


def bottleneck_forward(x_nchw, params, *, stride=1):
    """Pallas Bottleneck forward. x_nchw: [N, Cin, H, W] (PyTorch layout)."""
    w1, w2, w3, s1, b1, s2, b2, s3, b3 = params
    x = jnp.transpose(x_nchw, (0, 2, 3, 1)).astype(jnp.float32)  # NCHW -> NHWC
    N, H, W, Cin = x.shape
    P = w1.shape[1]
    Cout = w3.shape[1]
    assert stride == 1 and Cin == Cout, \
        "identity residual requires stride=1, Cin==Cout"
    # TODO(synk): stride>1 / downsample path not implemented.

    # Fold BN scales into the conv weights; cast weights to bf16 once.
    w1f = (w1 * s1.reshape(1, P)).astype(jnp.bfloat16)                 # (Cin, P)
    w2f = (w2 * s2.reshape(1, 1, 1, P)).reshape(9 * P, P).astype(jnp.bfloat16)
    w3f = (w3 * s3.reshape(1, Cout)).astype(jnp.bfloat16)              # (P, Cout)
    b1f = b1.reshape(1, P).astype(jnp.float32)
    b2f = b2.reshape(1, P).astype(jnp.float32)
    b3f = b3.reshape(1, Cout).astype(jnp.float32)

    out = pl.pallas_call(
        _bottleneck_kernel,
        out_shape=jax.ShapeDtypeStruct((N, H, W, Cout), jnp.float32),
        grid_spec=pltpu.PrefetchScalarGridSpec(
            num_scalar_prefetch=0,
            grid=(N,),
            in_specs=[
                pl.BlockSpec((None, H, W, Cin), lambda n: (n, 0, 0, 0)),
                pl.BlockSpec((Cin, P), lambda n: (0, 0)),
                pl.BlockSpec((9 * P, P), lambda n: (0, 0)),
                pl.BlockSpec((P, Cout), lambda n: (0, 0)),
                pl.BlockSpec((1, P), lambda n: (0, 0)),
                pl.BlockSpec((1, P), lambda n: (0, 0)),
                pl.BlockSpec((1, Cout), lambda n: (0, 0)),
            ],
            out_specs=pl.BlockSpec((None, H, W, Cout), lambda n: (n, 0, 0, 0)),
            scratch_shapes=[pltpu.VMEM((H + 2, W + 2, P), jnp.float32)],
        ),
        compiler_params=pltpu.CompilerParams(
            dimension_semantics=("parallel",),        # batch items independent
            vmem_limit_bytes=32 * 1024 * 1024,
        ),
    )(x, w1f, w2f, w3f, b1f, b2f, b3f)
    return jnp.transpose(out, (0, 3, 1, 2))  # NHWC -> NCHW


def _make_params(key, inplanes, planes, expansion=4, eps=1e-5):
    Cout = planes * expansion
    ks = jax.random.split(key, 15)
    w1 = 0.1 * jax.random.normal(ks[0], (inplanes, planes), jnp.float32)
    w2 = 0.1 * jax.random.normal(ks[1], (3, 3, planes, planes), jnp.float32)
    w3 = 0.1 * jax.random.normal(ks[2], (planes, Cout), jnp.float32)

    def bn(kg, kb, km, kv, c):
        gamma = 1.0 + 0.1 * jax.random.normal(kg, (c,), jnp.float32)
        beta = 0.1 * jax.random.normal(kb, (c,), jnp.float32)
        mean = 0.1 * jax.random.normal(km, (c,), jnp.float32)
        var = 1.0 + 0.1 * jax.random.uniform(kv, (c,), jnp.float32)
        scale = gamma / jnp.sqrt(var + eps)
        bias = beta - mean * scale
        return scale.reshape(1, c), bias.reshape(1, c)

    s1, b1 = bn(ks[3], ks[4], ks[5], ks[6], planes)
    s2, b2 = bn(ks[7], ks[8], ks[9], ks[10], planes)
    s3, b3 = bn(ks[11], ks[12], ks[13], ks[14], Cout)
    return (w1, w2, w3, s1, b1, s2, b2, s3, b3)


def _reference_forward(x_nchw, params):
    """Pure-JAX reference (inference BN, downsample=None, stride=1).

    Mirrors the kernel's bf16 operand rounding (f32 accumulation) so the
    comparison can use a tight tolerance.
    """
    w1, w2, w3, s1, b1, s2, b2, s3, b3 = params
    x = jnp.transpose(x_nchw, (0, 2, 3, 1)).astype(jnp.float32)
    Cin, P = w1.shape
    Cout = w3.shape[1]

    w1f = (w1 * s1.reshape(1, P)).astype(jnp.bfloat16)
    w2f = (w2 * s2.reshape(1, 1, 1, P)).astype(jnp.bfloat16)
    w3f = (w3 * s3.reshape(1, Cout)).astype(jnp.bfloat16)

    def conv(h, w, pad=0):
        return jax.lax.conv_general_dilated(
            h, w, (1, 1), [(pad, pad), (pad, pad)],
            dimension_numbers=("NHWC", "HWIO", "NHWC"),
            preferred_element_type=jnp.float32)

    h = conv(x.astype(jnp.bfloat16), w1f.reshape(1, 1, Cin, P))
    h = jnp.maximum(h + b1.reshape(1, 1, 1, P), 0.0)
    h = conv(h.astype(jnp.bfloat16), w2f, pad=1)
    h = jnp.maximum(h + b2.reshape(1, 1, 1, P), 0.0)
    h = conv(h.astype(jnp.bfloat16), w3f.reshape(1, 1, P, Cout))
    h = h + b3.reshape(1, 1, 1, Cout)
    out = jnp.maximum(h + x, 0.0)
    return jnp.transpose(out, (0, 3, 1, 2))


if __name__ == "__main__":
    # Cout = planes*4 = inplanes -> identity residual (downsample=None).
    N, inplanes, planes, Hs = 2, 16, 4, 16
    key = jax.random.PRNGKey(0)
    kx, kp = jax.random.split(key)
    x = jax.random.normal(kx, (N, inplanes, Hs, Hs), jnp.float32)
    params = _make_params(kp, inplanes, planes)

    out = bottleneck_forward(x, params, stride=1)
    out = jax.block_until_ready(out)

    ref = jax.block_until_ready(_reference_forward(x, params))
    assert out.shape == (N, planes * 4, Hs, Hs)
    err = float(jnp.max(jnp.abs(out - ref)))
    assert jnp.allclose(out, ref, atol=1e-3, rtol=1e-3), err
    print("KERNEL_OK")
</pallas_src>

<mosaic_0001>
module attributes {stable_mosaic.version = 11 : i64} {
  func.func @_bottleneck_kernel(%arg0: i32, %arg1: memref<1x16x16x16xf32, #tpu.memory_space<vmem>>, %arg2: memref<16x4xbf16, #tpu.memory_space<vmem>>, %arg3: memref<36x4xbf16, #tpu.memory_space<vmem>>, %arg4: memref<4x16xbf16, #tpu.memory_space<vmem>>, %arg5: memref<1x4xf32, #tpu.memory_space<vmem>>, %arg6: memref<1x4xf32, #tpu.memory_space<vmem>>, %arg7: memref<1x16xf32, #tpu.memory_space<vmem>>, %arg8: memref<1x16x16x16xf32, #tpu.memory_space<vmem>>, %arg9: memref<18x18x4xf32, #tpu.memory_space<vmem>>) attributes {dimension_semantics = [#tpu.dimension_semantics<parallel>], iteration_bounds = array<i64: 2>, scalar_prefetch = 0 : i64, scratch_operands = 1 : i64, tpu.core_type = #tpu.core_type<tc>, window_params = [{transform_indices = @transform_0, window_bounds = array<i64: 1, 16, 16, 16>}, {pipeline_mode = #tpu.pipeline_mode<synchronous>, transform_indices = @transform_1, window_bounds = array<i64: 16, 4>}, {pipeline_mode = #tpu.pipeline_mode<synchronous>, transform_indices = @transform_2, window_bounds = array<i64: 36, 4>}, {pipeline_mode = #tpu.pipeline_mode<synchronous>, transform_indices = @transform_3, window_bounds = array<i64: 4, 16>}, {pipeline_mode = #tpu.pipeline_mode<synchronous>, transform_indices = @transform_4, window_bounds = array<i64: 1, 4>}, {pipeline_mode = #tpu.pipeline_mode<synchronous>, transform_indices = @transform_5, window_bounds = array<i64: 1, 4>}, {pipeline_mode = #tpu.pipeline_mode<synchronous>, transform_indices = @transform_6, window_bounds = array<i64: 1, 16>}, {transform_indices = @transform_7, window_bounds = array<i64: 1, 16, 16, 16>}]} {
    %c0 = arith.constant 0 : index
    %c0_0 = arith.constant 0 : index
    %c0_1 = arith.constant 0 : index
    %c0_2 = arith.constant 0 : index
    %0 = vector.load %arg1[%c0, %c0_0, %c0_1, %c0_2] : memref<1x16x16x16xf32, #tpu.memory_space<vmem>>, vector<1x16x16x16xf32>
    %1 = vector.shape_cast %0 : vector<1x16x16x16xf32> to vector<16x16x16xf32>
    %2 = vector.shape_cast %1 : vector<16x16x16xf32> to vector<256x16xf32>
    %3 = arith.truncf %2 : vector<256x16xf32> to vector<256x16xbf16>
    %c0_3 = arith.constant 0 : index
    %c0_4 = arith.constant 0 : index
    %4 = vector.load %arg2[%c0_3, %c0_4] : memref<16x4xbf16, #tpu.memory_space<vmem>>, vector<16x4xbf16>
    %cst = arith.constant dense<0.000000e+00> : vector<256x4xf32>
    %5 = tpu.matmul %3, %4, %cst {dimension_numbers = #tpu.dot_dimension_numbers<[1], [0], [0], [1], [0, 0, 1, 1], [], []>} : vector<256x16xbf16>, vector<16x4xbf16>, vector<256x4xf32> -> vector<256x4xf32>
    %c0_5 = arith.constant 0 : index
    %c0_6 = arith.constant 0 : index
    %6 = vector.load %arg5[%c0_5, %c0_6] : memref<1x4xf32, #tpu.memory_space<vmem>>, vector<1x4xf32>
    %7 = vector.broadcast %6 : vector<1x4xf32> to vector<256x4xf32>
    %8 = arith.addf %5, %7 : vector<256x4xf32>
    %cst_7 = arith.constant 0.000000e+00 : f32
    %9 = vector.broadcast %cst_7 : f32 to vector<256x4xf32>
    %10 = arith.maximumf %8, %9 : vector<256x4xf32>
    %cst_8 = arith.constant 0.000000e+00 : f32
    %11 = vector.broadcast %cst_8 : f32 to vector<1x18x4xf32>
    %cst_9 = arith.constant 0.000000e+00 : f32
    %12 = vector.broadcast %cst_9 : f32 to vector<18x1x4xf32>
    %c0_10 = arith.constant 0 : index
    %c0_11 = arith.constant 0 : index
    %c0_12 = arith.constant 0 : index
    %13 = vector.load %arg9[%c0_10, %c0_11, %c0_12] : memref<18x18x4xf32, #tpu.memory_space<vmem>>, vector<1x18x4xf32>
    tpu.vector_store %arg9[%c0_10, %c0_11, %c0_12], %11 {strides = array<i32>} : memref<18x18x4xf32, #tpu.memory_space<vmem>>, vector<1x18x4xf32>,
    %c17 = arith.constant 17 : index
    %c0_13 = arith.constant 0 : index
    %c0_14 = arith.constant 0 : index
    %14 = vector.load %arg9[%c17, %c0_13, %c0_14] : memref<18x18x4xf32, #tpu.memory_space<vmem>>, vector<1x18x4xf32>
    tpu.vector_store %arg9[%c17, %c0_13, %c0_14], %11 {strides = array<i32>} : memref<18x18x4xf32, #tpu.memory_space<vmem>>, vector<1x18x4xf32>,
    %c0_15 = arith.constant 0 : index
    %c0_16 = arith.constant 0 : index
    %c0_17 = arith.constant 0 : index
    %15 = vector.load %arg9[%c0_15, %c0_16, %c0_17] : memref<18x18x4xf32, #tpu.memory_space<vmem>>, vector<18x1x4xf32>
    tpu.vector_store %arg9[%c0_15, %c0_16, %c0_17], %12 {strides = array<i32>} : memref<18x18x4xf32, #tpu.memory_space<vmem>>, vector<18x1x4xf32>,
    %c0_18 = arith.constant 0 : index
    %c17_19 = arith.constant 17 : index
    %c0_20 = arith.constant 0 : index
    %16 = vector.load %arg9[%c0_18, %c17_19, %c0_20] : memref<18x18x4xf32, #tpu.memory_space<vmem>>, vector<18x1x4xf32>
    tpu.vector_store %arg9[%c0_18, %c17_19, %c0_20], %12 {strides = array<i32>} : memref<18x18x4xf32, #tpu.memory_space<vmem>>, vector<18x1x4xf32>,
    %17 = vector.shape_cast %10 : vector<256x4xf32> to vector<16x16x4xf32>
    %c1 = arith.constant 1 : index
    %c1_21 = arith.constant 1 : index
    %c0_22 = arith.constant 0 : index
    %18 = vector.load %arg9[%c1, %c1_21, %c0_22] : memref<18x18x4xf32, #tpu.memory_space<vmem>>, vector<16x16x4xf32>
    tpu.vector_store %arg9[%c1, %c1_21, %c0_22], %17 {strides = array<i32>} : memref<18x18x4xf32, #tpu.memory_space<vmem>>, vector<16x16x4xf32>,
    %c0_23 = arith.constant 0 : index
    %c0_24 = arith.constant 0 : index
    %c0_25 = arith.constant 0 : index
    %19 = vector.load %arg9[%c0_23, %c0_24, %c0_25] : memref<18x18x4xf32, #tpu.memory_space<vmem>>, vector<16x16x4xf32>
    %20 = vector.shape_cast %19 : vector<16x16x4xf32> to vector<256x4xf32>
    %c0_26 = arith.constant 0 : index
    %c1_27 = arith.constant 1 : index
    %c0_28 = arith.constant 0 : index
    %21 = vector.load %arg9[%c0_26, %c1_27, %c0_28] : memref<18x18x4xf32, #tpu.memory_space<vmem>>, vector<16x16x4xf32>
    %22 = vector.shape_cast %21 : vector<16x16x4xf32> to vector<256x4xf32>
    %c0_29 = arith.constant 0 : index
    %c2 = arith.constant 2 : index
    %c0_30 = arith.constant 0 : index
    %23 = vector.load %arg9[%c0_29, %c2, %c0_30] : memref<18x18x4xf32, #tpu.memory_space<vmem>>, vector<16x16x4xf32>
    %24 = vector.shape_cast %23 : vector<16x16x4xf32> to vector<256x4xf32>
    %c1_31 = arith.constant 1 : index
    %c0_32 = arith.constant 0 : index
    %c0_33 = arith.constant 0 : index
    %25 = vector.load %arg9[%c1_31, %c0_32, %c0_33] : memref<18x18x4xf32, #tpu.memory_space<vmem>>, vector<16x16x4xf32>
    %26 = vector.shape_cast %25 : vector<16x16x4xf32> to vector<256x4xf32>
    %c1_34 = arith.constant 1 : index
    %c1_35 = arith.constant 1 : index
    %c0_36 = arith.constant 0 : index
    %27 = vector.load %arg9[%c1_34, %c1_35, %c0_36] : memref<18x18x4xf32, #tpu.memory_space<vmem>>, vector<16x16x4xf32>
    %28 = vector.shape_cast %27 : vector<16x16x4xf32> to vector<256x4xf32>
    %c1_37 = arith.constant 1 : index
    %c2_38 = arith.constant 2 : index
    %c0_39 = arith.constant 0 : index
    %29 = vector.load %arg9[%c1_37, %c2_38, %c0_39] : memref<18x18x4xf32, #tpu.memory_space<vmem>>, vector<16x16x4xf32>
    %30 = vector.shape_cast %29 : vector<16x16x4xf32> to vector<256x4xf32>
    %c2_40 = arith.constant 2 : index
    %c0_41 = arith.constant 0 : index
    %c0_42 = arith.constant 0 : index
    %31 = vector.load %arg9[%c2_40, %c0_41, %c0_42] : memref<18x18x4xf32, #tpu.memory_space<vmem>>, vector<16x16x4xf32>
    %32 = vector.shape_cast %31 : vector<16x16x4xf32> to vector<256x4xf32>
    %c2_43 = arith.constant 2 : index
    %c1_44 = arith.constant 1 : index
    %c0_45 = arith.constant 0 : index
    %33 = vector.load %arg9[%c2_43, %c1_44, %c0_45] : memref<18x18x4xf32, #tpu.memory_space<vmem>>, vector<16x16x4xf32>
    %34 = vector.shape_cast %33 : vector<16x16x4xf32> to vector<256x4xf32>
    %c2_46 = arith.constant 2 : index
    %c2_47 = arith.constant 2 : index
    %c0_48 = arith.constant 0 : index
    %35 = vector.load %arg9[%c2_46, %c2_47, %c0_48] : memref<18x18x4xf32, #tpu.memory_space<vmem>>, vector<16x16x4xf32>
    %36 = vector.shape_cast %35 : vector<16x16x4xf32> to vector<256x4xf32>
    %37 = tpu.concatenate %20, %22, %24, %26, %28, %30, %32, %34, %36 in 1 : vector<256x4xf32>, vector<256x4xf32>, vector<256x4xf32>, vector<256x4xf32>, vector<256x4xf32>, vector<256x4xf32>, vector<256x4xf32>, vector<256x4xf32>, vector<256x4xf32> -> vector<256x36xf32>
    %38 = arith.truncf %37 : vector<256x36xf32> to vector<256x36xbf16>
    %c0_49 = arith.constant 0 : index
    %c0_50 = arith.constant 0 : index
    %39 = vector.load %arg3[%c0_49, %c0_50] : memref<36x4xbf16, #tpu.memory_space<vmem>>, vector<36x4xbf16>
    %cst_51 = arith.constant dense<0.000000e+00> : vector<256x4xf32>
    %40 = tpu.matmul %38, %39, %cst_51 {dimension_numbers = #tpu.dot_dimension_numbers<[1], [0], [0], [1], [0, 0, 1, 1], [], []>} : vector<256x36xbf16>, vector<36x4xbf16>, vector<256x4xf32> -> vector<256x4xf32>
    %c0_52 = arith.constant 0 : index
    %c0_53 = arith.constant 0 : index
    %41 = vector.load %arg6[%c0_52, %c0_53] : memref<1x4xf32, #tpu.memory_space<vmem>>, vector<1x4xf32>
    %42 = vector.broadcast %41 : vector<1x4xf32> to vector<256x4xf32>
    %43 = arith.addf %40, %42 : vector<256x4xf32>
    %cst_54 = arith.constant 0.000000e+00 : f32
    %44 = vector.broadcast %cst_54 : f32 to vector<256x4xf32>
    %45 = arith.maximumf %43, %44 : vector<256x4xf32>
    %46 = arith.truncf %45 : vector<256x4xf32> to vector<256x4xbf16>
    %c0_55 = arith.constant 0 : index
    %c0_56 = arith.constant 0 : index
    %47 = vector.load %arg4[%c0_55, %c0_56] : memref<4x16xbf16, #tpu.memory_space<vmem>>, vector<4x16xbf16>
    %cst_57 = arith.constant dense<0.000000e+00> : vector<256x16xf32>
    %48 = tpu.matmul %46, %47, %cst_57 {dimension_numbers = #tpu.dot_dimension_numbers<[1], [0], [0], [1], [0, 0, 1, 1], [], []>} : vector<256x4xbf16>, vector<4x16xbf16>, vector<256x16xf32> -> vector<256x16xf32>
    %c0_58 = arith.constant 0 : index
    %c0_59 = arith.constant 0 : index
    %49 = vector.load %arg7[%c0_58, %c0_59] : memref<1x16xf32, #tpu.memory_space<vmem>>, vector<1x16xf32>
    %50 = vector.broadcast %49 : vector<1x16xf32> to vector<256x16xf32>
    %51 = arith.addf %48, %50 : vector<256x16xf32>
    %52 = arith.addf %51, %2 : vector<256x16xf32>
    %cst_60 = arith.constant 0.000000e+00 : f32
    %53 = vector.broadcast %cst_60 : f32 to vector<256x16xf32>
    %54 = arith.maximumf %52, %53 : vector<256x16xf32>
    %55 = vector.shape_cast %54 : vector<256x16xf32> to vector<16x16x16xf32>
    %c0_61 = arith.constant 0 : index
    %c0_62 = arith.constant 0 : index
    %c0_63 = arith.constant 0 : index
    %c0_64 = arith.constant 0 : index
    %56 = vector.load %arg8[%c0_61, %c0_62, %c0_63, %c0_64] : memref<1x16x16x16xf32, #tpu.memory_space<vmem>>, vector<1x16x16x16xf32>
    %57 = vector.shape_cast %56 : vector<1x16x16x16xf32> to vector<16x16x16xf32>
    %58 = vector.shape_cast %55 : vector<16x16x16xf32> to vector<1x16x16x16xf32>
    tpu.vector_store %arg8[%c0_61, %c0_62, %c0_63, %c0_64], %58 {strides = array<i32>} : memref<1x16x16x16xf32, #tpu.memory_space<vmem>>, vector<1x16x16x16xf32>,
    return
  }
  func.func @transform_0(%arg0: i32) -> (i32, i32, i32, i32) {
    %c0_i32 = arith.constant 0 : i32
    %c0_i32_0 = arith.constant 0 : i32
    %c0_i32_1 = arith.constant 0 : i32
    %c0_i32_2 = arith.constant 0 : i32
    return %arg0, %c0_i32, %c0_i32_0, %c0_i32_1 : i32, i32, i32, i32
  }
  func.func @transform_1(%arg0: i32) -> (i32, i32) {
    %c0_i32 = arith.constant 0 : i32
    %c0_i32_0 = arith.constant 0 : i32
    %c0_i32_1 = arith.constant 0 : i32
    return %c0_i32, %c0_i32_0 : i32, i32
  }
  func.func @transform_2(%arg0: i32) -> (i32, i32) {
    %c0_i32 = arith.constant 0 : i32
    %c0_i32_0 = arith.constant 0 : i32
    %c0_i32_1 = arith.constant 0 : i32
    return %c0_i32, %c0_i32_0 : i32, i32
  }
  func.func @transform_3(%arg0: i32) -> (i32, i32) {
    %c0_i32 = arith.constant 0 : i32
    %c0_i32_0 = arith.constant 0 : i32
    %c0_i32_1 = arith.constant 0 : i32
    return %c0_i32, %c0_i32_0 : i32, i32
  }
  func.func @transform_4(%arg0: i32) -> (i32, i32) {
    %c0_i32 = arith.constant 0 : i32
    %c0_i32_0 = arith.constant 0 : i32
    %c0_i32_1 = arith.constant 0 : i32
    return %c0_i32, %c0_i32_0 : i32, i32
  }
  func.func @transform_5(%arg0: i32) -> (i32, i32) {
    %c0_i32 = arith.constant 0 : i32
    %c0_i32_0 = arith.constant 0 : i32
    %c0_i32_1 = arith.constant 0 : i32
    return %c0_i32, %c0_i32_0 : i32, i32
  }
  func.func @transform_6(%arg0: i32) -> (i32, i32) {
    %c0_i32 = arith.constant 0 : i32
    %c0_i32_0 = arith.constant 0 : i32
    %c0_i32_1 = arith.constant 0 : i32
    return %c0_i32, %c0_i32_0 : i32, i32
  }
  func.func @transform_7(%arg0: i32) -> (i32, i32, i32, i32) {
    %c0_i32 = arith.constant 0 : i32
    %c0_i32_0 = arith.constant 0 : i32
    %c0_i32_1 = arith.constant 0 : i32
    %c0_i32_2 = arith.constant 0 : i32
    return %arg0, %c0_i32, %c0_i32_0, %c0_i32_1 : i32, i32, i32, i32
  }
}

</mosaic_0001>

<bundles_post_ra>
// kernel: tpu_custom_call.1
= control target key start
LH: loop header
LB: loop body
LE: loop exit
PB: predicated region body
PF: predicated region fallthrough
CT: control target
= control target key end

     0   :  { %12 = vsyncpa [#allocation4], 0  ;;  %s5502_s0 = inlined_call_operand.hbm [shape: f32[2,16,16,16], index: 0, kind: input, shape index: {}]   ;;  %s5503_s1 = inlined_call_operand.vmem [shape: bf16[16,4], index: 1, kind: input, shape index: {}]   ;;  %s5504_s2 = inlined_call_operand.vmem [shape: bf16[36,4], index: 2, kind: input, shape index: {}]   ;;  %s5505_s3 = inlined_call_operand.vmem [shape: bf16[4,16], index: 3, kind: input, shape index: {}]   ;;  %s5506_s4 = inlined_call_operand.vmem [shape: f32[1,4], index: 4, kind: input, shape index: {}]   ;;  %s5507_s5 = inlined_call_operand.vmem [shape: f32[1,4], index: 5, kind: input, shape index: {}]   ;;  %s5508_s6 = inlined_call_operand.vmem [shape: f32[1,16], index: 6, kind: input, shape index: {}]   ;;  %s5509_s7 = inlined_call_operand.hbm [shape: f32[2,16,16,16], index: 7, kind: output, shape index: {}]  }
   0x1   :  { %14 = vsyncpa [#allocation4 + $0x1], 0 }
   0x2   :  { %15 = vsyncpa [#allocation5], 0 }
   0x3   :  { %17 = vsyncpa [#allocation5 + $0x1], 0  ;;  %s4090_s24 = smov 0   ;;  %s4092_s25 = smov 0  }
   0x4   :  { %s4094_s26 = smov 0   ;;  %s4096_s27 = smov 0  }
   0x5 LB: > { %s4111_s28 = sadd.s32 4294967295, %s4034_s27   ;;  %s2965_s29 = sadd.s32 4294967294, %s4034_s27   ;;  %s4034_s27 = sphi %s4096_s27, %s5553_s27   ;;  %s4030_s26 = sphi %s4094_s26, %s5552_s26   ;;  %s4026_s25 = sphi %s4092_s25, %s5551_s25   ;;  %s4022_s24 = sphi %s4090_s24, %s5550_s24  }
   0x6   : > { %s4115_s30 = sadd.s32 1, %s4034_s27   ;;  %s30_s8 = sadd.s32 1, %s4030_s26 }
   0x7   : > { %s27_s9 = ssub.s32 %s4034_s27, %s4115_s30  ;;  %p37_p0 = scmp.ne.s32.totalorder %s4030_s26, %s4026_s25 }
   0x8   : > { %p28_p1 = scmp.eq.s32.totalorder %s27_s9, 0  ;;  %p38_p2 = scmp.eq.s32.totalorder %s4034_s27, 0 }
   0x9   : > { %p43_p3 = scmp.ne.s32.totalorder %s4026_s25, %s4022_s24  ;;  %p44_p4 = scmp.eq.s32.totalorder %s4111_s28, 0 }
   0xa   : > { %s4127_s10 = scalar_select %p28_p1, %s4030_s26, %s30_s8  }
   0xb   : > { %p4129_p5 = por %p38_p2, %p37_p0  ;;  %p4133_p6 = por %p44_p4, %p43_p3 }
   0xc   : > { %p193_p7 = scmp.eq.s32.totalorder %s4111_s28, 1  ;;  %p199_p8 = scmp.eq.s32.totalorder %s2965_s29, 1 }
   0xd   : > { %p3211_p10 = scmp.lt.s32.totalorder %s4034_s27, 2  ;;  %s237_s15 = sand.u32 1, %s4030_s26  }
   0xe   : > { %p4140_p11 = por %p193_p7, %p37_p0  ;;  %p4144_p12 = por %p199_p8, %p43_p3 }
   0xf   : > { %s3034_s16 = sshll.u32 %s4034_s27, 12  ;;  %s2968_s17 = sshll.u32 %s237_s15, 8 }
  0x10   : > { %s5523_s13 = scalar_select %p4140_p11, 1, 0 }
  0x11   : > { %s5524_s14 = scalar_select %p4144_p12, 1, 0 }
  0x12   : > { %s4153_s20 = scalar_lea.hbm %s5502_s0, %s3034_s16  ;;  %s241_s21 = scalar_lea.vmem [#allocation3], %s2968_s17 }
  0x13   : > { %s248_s22 = sshll.u32 %s241_s21, 4  ;;  %p4157_p13 = pnand %p3211_p10, %p4129_p5  ;;  %s4161_s22 = int_to_ptr.vmem [resolvable:$true] %s248_s22 }
  0x14   : > { %s4163_s29 = scalar_lea.sflag [#allocation4], %s237_s15  ;;  %s3938_s8 = scalar_lea.hbm %s4153_s20, 4096 }
  0x15   : > { %p3939_p0 = scmp.ne.s32.totalorder %s4153_s20, %s3938_s8  ;;  %p3940_p1 = pneg %p4157_p13 }
  0x16   : > { %s3943_s16 = scalar_lea.hbm %s5502_s0, 8192  ;;  %p3944_p4 = scmp.lt.u32.totalorder %s4153_s20, %s5502_s0 }
  0x17   : > { %p3941_p2 = pnand %p3940_p1, %p3939_p0  ;;  %p3945_p5 = scmp.lt.u32.totalorder %s3943_s16, %s3938_s8 }
  0x18   : > { %p3947_p8 = scmp.lt.u32.totalorder %s3938_s8, %s4153_s20 }
  0x19   : > { %p3942_p3 = pneg %p3941_p2  ;;  %p3946_p7 = por %p3945_p5, %p3944_p4 }
  0x1b   : > { %p3948_p10 = por %p3947_p8, %p3946_p7 }
  0x1d   : > { %p3949_p9 = pnand %p3948_p10, %p3942_p3 }
  0x1f   : > { %3952 = shalt.err (!%p3949_p9)
}
  0x20   : > { %s3953_s15 = scalar_lea.vmem %s4161_s22, 4096  ;;  %s4036_s19 = smov [#allocation3]  }
  0x21   : > { %p3954_p0 = scmp.ne.s32.totalorder %s4161_s22, %s3953_s15  ;;  %s3958_s21 = sshll.u32 %s4036_s19, 4  ;;  %s3959_s21 = int_to_ptr.vmem [resolvable:$false] %s3958_s21 }
  0x22   : > { %s3960_s9 = scalar_lea.vmem %s3959_s21, 8192  ;;  %p3961_p11 = scmp.lt.s32.totalorder %s4161_s22, %s3959_s21 }
  0x23   : > { %p3956_p2 = pnand %p3954_p0, %p3940_p1  ;;  %p3962_p4 = scmp.lt.s32.totalorder %s3960_s9, %s3953_s15 }
  0x25   : > { %p3957_p12 = pneg %p3956_p2  ;;  %p3963_p5 = por %p3962_p4, %p3961_p11 }
  0x27   : > { %p3964_p7 = pnand %p3963_p5, %p3957_p12 }
  0x29   : > { %3967 = shalt.err (!%p3964_p7)
}
  0x2a   : > { %s4037_s8 = smov 128   ;;  %s4038_s11 = smov 8  }
  0x2b   : > { %3206 = dma.hbm_to_vmem [thread:$0]  (!%p4157_p13), %s4153_s20, 4096, %s4161_s22, %s4163_s29, %s4037_s8, %s4037_s8, %s4038_s11  }
  0x2c   : > { %p2971_p9 = scmp.ge.s32.totalorder %s4034_s27, 1  ;;  %p256_p1 = scmp.lt.s32.totalorder %s4034_s27, 3 }
  0x2e   : > { %p257_p3 = pnand %p2971_p9, %p256_p1 }
  0x30   : > { %260 = sbr.rel (%p257_p3) target bundleno = 1120 (0x460), region = 48 }
  0x37   : > { %s4194_s16 = sand.u32 1, %s4026_s25  }
  0x38   : > { %s5511_s17 = sshll.u32 %s4194_s16, 8  ;;  %s263_s18 = scalar_lea.sflag [#allocation4], %s4194_s16 }
  0x39   : > { %s4200_s15 = scalar_lea.vmem [#allocation3], %s5511_s17 }
  0x3a   : > { %4013 = dma.done.wait (%p4133_p6), %s263_s18, 4096  }
  0x3b   : > { %4015 = vsyncadd (%p4133_p6), %s263_s18, 4294963200  ;;  %v3897_v0 = vld [vmem:[%s5503_s1] sm:$0xff]   ;;  %v298_v1 = vld [vmem:[%s4200_s15] sm:$0xff]  ;;  %vm361_vm0 = vcmask 130048   ;;  %vm606_vm1 = vcmask 25600   ;;  %vm603_vm2 = vcmask 31744  }
  0x3c   : > { %v299_v2 = vld [vmem:[%s4200_s15 + $0x8] sm:$0xff]  ;;  %v300_v3 = vld [vmem:[%s4200_s15 + $0x10] sm:$0xff]  ;;  %3089 = vmatprep.subr.bf16.mxu0 %v3897_v0  ;;  %v301_v5 = vld [vmem:[%s4200_s15 + $0x18] sm:$0xff]  ;;  %3195 = vmatprep.subr.bf16.mxu1 %v3897_v0  ;;  %v4039_v49 = vmov 0.0   ;;  %vm612_vm3 = vcmask 24576   ;;  %s4040_s12 = smov 8  }
  0x3d   : > { %v330_v4 = vpack.c.bf16 %v299_v2, %v298_v1  ;;  %v314_v6 = vld [vmem:[%s4200_s15 + $0x80] sm:$0xff]  ;;  %v315_v7 = vld [vmem:[%s4200_s15 + $0x88] sm:$0xff]  ;;  %3090 = vmatpush3.bf16.msra.mxu0 %v3897_v0  ;;  %v331_v8 = vpack.c.bf16 %v301_v5, %v300_v3  ;;  %3196 = vmatpush3.bf16.msra.mxu1 %v3897_v0  ;;  %v316_v10 = vld [vmem:[%s4200_s15 + $0x90] sm:$0xff]  ;;  %607 = vst.msk [vmem:[#allocation2 + $0x10] sm:$0x3] %vm606_vm1, %v4039_v49  ;;  %s4041_s23 = smov 4  }
  0x3e   : > { %v338_v9 = vpack.c.bf16 %v315_v7, %v314_v6  ;;  %v317_v11 = vld [vmem:[%s4200_s15 + $0x98] sm:$0xff]  ;;  %v302_v12 = vld [vmem:[%s4200_s15 + $0x20] sm:$0xff]  ;;  %v303_v14 = vld [vmem:[%s4200_s15 + $0x28] sm:$0xff]  ;;  %611 = vst.msk [vmem:[#allocation2 + $0x1a8] sm:$0x3] %vm606_vm1, %v4039_v49  ;;  %s4042_s21 = smov 24  }
  0x3f   : > { %3091 = vmatprep.mubr.msk.bf16.mxu0 %vm361_vm0, %v330_v4  ;;  %v339_v13 = vpack.c.bf16 %v317_v11, %v316_v10  ;;  %v332_v15 = vpack.c.bf16 %v303_v14, %v302_v12  ;;  %v318_v16 = vld [vmem:[%s4200_s15 + $0xa0] sm:$0xff]  ;;  %v319_v17 = vld [vmem:[%s4200_s15 + $0xa8] sm:$0xff]  ;;  %v304_v18 = vld [vmem:[%s4200_s15 + $0x30] sm:$0xff]  ;;  %604 = vst.msk [vmem:[#allocation2] sm:$0xff] %vm603_vm2, %v4039_v49  ;;  %s4043_s9 = smov 12   ;;  %s4044_s8 = smov 28  }
  0x40   : > { %3107 = vmatprep.mubr.msk.bf16.mxu1 %vm361_vm0, %v338_v9  ;;  %3092 = vmatmul.mubr.msk.bf16.vlgmr.msra.gmra.mrb[0].mxu0 %vm361_vm0, %v331_v8  ;;  %v305_v19 = vld [vmem:[%s4200_s15 + $0x38] sm:$0xff]  ;;  %v340_v20 = vpack.c.bf16 %v319_v17, %v318_v16  ;;  %v320_v21 = vld [vmem:[%s4200_s15 + $0xb0] sm:$0xff]  ;;  %v306_v23 = vld [vmem:[%s4200_s15 + $0x40] sm:$0xff]  ;;  %605 = vst.msk [vmem:[#allocation2 + $0x8] sm:$0xff] %vm603_vm2, %v4039_v49  ;;  %s4045_s11 = smov 16   ;;  %s4046_s18 = smov 32  }
  0x41   : > { %3108 = vmatmul.mubr.msk.bf16.vlgmr.msra.gmra.mrb[0].mxu1 %vm361_vm0, %v339_v13  ;;  %3095 = vmatprep.mubr.msk.bf16.mxu0 %vm361_vm0, %v332_v15  ;;  %v321_v22 = vld [vmem:[%s4200_s15 + $0xb8] sm:$0xff]  ;;  %v307_v24 = vld [vmem:[%s4200_s15 + $0x48] sm:$0xff]  ;;  %v322_v25 = vld [vmem:[%s4200_s15 + $0xc0] sm:$0xff]  ;;  %v333_v27 = vpack.c.bf16 %v305_v19, %v304_v18  ;;  %631 = vst.msk [vmem:[#allocation2 + $0x11] sm:$0x1] %vm612_vm3, %v4039_v49  ;;  %s4047_s20 = smov 20  }
  0x42   : > { %3111 = vmatprep.mubr.msk.bf16.mxu1 %vm361_vm0, %v340_v20  ;;  %v323_v26 = vld [vmem:[%s4200_s15 + $0xc8] sm:$0xff]  ;;  %v341_v28 = vpack.c.bf16 %v321_v22, %v320_v21  ;;  %v334_v29 = vpack.c.bf16 %v307_v24, %v306_v23  ;;  %v308_v31 = vld [vmem:[%s4200_s15 + $0x50] sm:$0xff]  ;;  %v309_v32 = vld [vmem:[%s4200_s15 + $0x58] sm:$0xff]  ;;  %609 = vst.msk [vmem:[#allocation2 + $0x198] sm:$0xff] %vm603_vm2, %v4039_v49  ;;  %vm2349_vm4 = vcmask 1041408   ;;  %vm2027_vm5 = vcmask 64512  }
  0x43   : > { %v342_v30 = vpack.c.bf16 %v323_v26, %v322_v25  ;;  %v324_v33 = vld [vmem:[%s4200_s15 + $0xd0] sm:$0xff]  ;;  %v325_v34 = vld [vmem:[%s4200_s15 + $0xd8] sm:$0xff]  ;;  %v310_v35 = vld [vmem:[%s4200_s15 + $0x60] sm:$0xff]  ;;  %v335_v39 = vpack.c.bf16 %v309_v32, %v308_v31  ;;  %610 = vst.msk [vmem:[#allocation2 + $0x1a0] sm:$0xff] %vm603_vm2, %v4039_v49  ;;  %vm2060_vm6 = vcmask 97280   ;;  %vm2125_vm7 = vcmask 162816  }
  0x44   : > { %v311_v36 = vld [vmem:[%s4200_s15 + $0x68] sm:$0xff]  ;;  %v326_v37 = vld [vmem:[%s4200_s15 + $0xe0] sm:$0xff]  ;;  %v343_v40 = vpack.c.bf16 %v325_v34, %v324_v33  ;;  %v312_v43 = vld [vmem:[%s4200_s15 + $0x70] sm:$0xff]  ;;  %614 = vst.msk [vmem:[#allocation2 + $0x18] sm:$0x1] %vm612_vm3, %v4039_v49  ;;  %vm2158_vm8 = vcmask 195584  }
  0x45   : > { %v327_v38 = vld [vmem:[%s4200_s15 + $0xe8] sm:$0xff]  ;;  %v336_v41 = vpack.c.bf16 %v311_v36, %v310_v35  ;;  %v313_v44 = vld [vmem:[%s4200_s15 + $0x78] sm:$0xff]  ;;  %v328_v45 = vld [vmem:[%s4200_s15 + $0xf0] sm:$0xff]  ;;  %615 = vst.msk [vmem:[#allocation2 + $0x30] sm:$0x1] %vm612_vm3, %v4039_v49  ;;  %vm2191_vm9 = vcmask 228352  }
  0x46   : > { %v344_v42 = vpack.c.bf16 %v327_v38, %v326_v37  ;;  %v329_v46 = vld [vmem:[%s4200_s15 + $0xf8] sm:$0xff]  ;;  %v337_v47 = vpack.c.bf16 %v313_v44, %v312_v43  ;;  %616 = vst.msk [vmem:[#allocation2 + $0x48] sm:$0x1] %vm612_vm3, %v4039_v49  ;;  %617 = vst.msk [vmem:[#allocation2 + $0x60] sm:$0x1] %vm612_vm3, %v4039_v49  ;;  %vm2224_vm10 = vcmask 261120  }
  0x47   : > { %v345_v48 = vpack.c.bf16 %v329_v46, %v328_v45  ;;  %618 = vst.msk [vmem:[#allocation2 + $0x78] sm:$0x1] %vm612_vm3, %v4039_v49  ;;  %619 = vst.msk [vmem:[#allocation2 + $0x90] sm:$0x1] %vm612_vm3, %v4039_v49  ;;  %v746_v50 = vld [vmem:[#allocation2 + $0x2] sm:$0xff]  ;;  %vm2300_vm11 = vcmask 293888  }
  0x48   : > { %3096 = vmatmul.mubr.msk.bf16.gmra.mrb[4].mxu0 %vm361_vm0, %v333_v27  ;;  %620 = vst.msk [vmem:[#allocation2 + $0xa8] sm:$0x1] %vm612_vm3, %v4039_v49  ;;  %621 = vst.msk [vmem:[#allocation2 + $0xc0] sm:$0x1] %vm612_vm3, %v4039_v49  ;;  %v747_v51 = vld [vmem:[#allocation2 + $0xa] sm:$0xff]  ;;  %v714_v52 = vld [vmem:[#allocation2 + $0x1] sm:$0xff] }
  0x49   : > { %3112 = vmatmul.mubr.msk.bf16.gmra.mrb[4].mxu1 %vm361_vm0, %v341_v28  ;;  %3099 = vmatprep.mubr.msk.bf16.mxu0 %vm361_vm0, %v334_v29  ;;  %622 = vst.msk [vmem:[#allocation2 + $0xd8] sm:$0x1] %vm612_vm3, %v4039_v49  ;;  %623 = vst.msk [vmem:[#allocation2 + $0xf0] sm:$0x1] %vm612_vm3, %v4039_v49  ;;  %v3262_v53 = vpack.i.bf16 %v747_v51, %v746_v50  ;;  %v715_v54 = vld [vmem:[#allocation2 + $0x9] sm:$0xff]  ;;  %s3035_s19 = sshll.u32 %s4111_s28, 12 }
  0x4a   : > { %3115 = vmatprep.mubr.msk.bf16.mxu1 %vm361_vm0, %v342_v30  ;;  %624 = vst.msk [vmem:[#allocation2 + $0x108] sm:$0x1] %vm612_vm3, %v4039_v49  ;;  %625 = vst.msk [vmem:[#allocation2 + $0x120] sm:$0x1] %vm612_vm3, %v4039_v49  ;;  %v3257_v55 = vpack.i.bf16 %v715_v54, %v714_v52  ;;  %v4302_v56 = vld [vmem:[%s5506_s4] ss:$0 sm:$0xff] }
  0x4b   : > { %626 = vst.msk [vmem:[#allocation2 + $0x138] sm:$0x1] %vm612_vm3, %v4039_v49  ;;  %627 = vst.msk [vmem:[#allocation2 + $0x150] sm:$0x1] %vm612_vm3, %v4039_v49  ;;  %3263 = vrot.lane.b32.xlu1 %v3262_v53, %s4040_s12  ;;  %s2879_s28 = scalar_lea.sflag [#allocation5], %s4194_s16  ;;  %p5547_p11 = scmp.ne.s32.totalorder %s5523_s13, 0 }
  0x4c   : > { %628 = vst.msk [vmem:[#allocation2 + $0x168] sm:$0x1] %vm612_vm3, %v4039_v49  ;;  %629 = vst.msk [vmem:[#allocation2 + $0x180] sm:$0x1] %vm612_vm3, %v4039_v49  ;;  %3258 = vrot.lane.b32.xlu0 %v3257_v55, %s4041_s23 }
  0x4d   : > { %632 = vst.msk [vmem:[#allocation2 + $0x29] sm:$0x1] %vm612_vm3, %v4039_v49  ;;  %633 = vst.msk [vmem:[#allocation2 + $0x41] sm:$0x1] %vm612_vm3, %v4039_v49 }
  0x4e   : > { %634 = vst.msk [vmem:[#allocation2 + $0x59] sm:$0x1] %vm612_vm3, %v4039_v49  ;;  %635 = vst.msk [vmem:[#allocation2 + $0x71] sm:$0x1] %vm612_vm3, %v4039_v49 }
  0x4f   : > { %636 = vst.msk [vmem:[#allocation2 + $0x89] sm:$0x1] %vm612_vm3, %v4039_v49  ;;  %637 = vst.msk [vmem:[#allocation2 + $0xa1] sm:$0x1] %vm612_vm3, %v4039_v49 }
  0x50   : > { %3100 = vmatmul.mubr.msk.bf16.gmra.mrb[8].mxu0 %vm361_vm0, %v335_v39  ;;  %638 = vst.msk [vmem:[#allocation2 + $0xb9] sm:$0x1] %vm612_vm3, %v4039_v49  ;;  %639 = vst.msk [vmem:[#allocation2 + $0xd1] sm:$0x1] %vm612_vm3, %v4039_v49 }
  0x51   : > { %3116 = vmatmul.mubr.msk.bf16.gmra.mrb[8].mxu1 %vm361_vm0, %v343_v40  ;;  %3103 = vmatprep.mubr.msk.bf16.mxu0 %vm361_vm0, %v336_v41  ;;  %640 = vst.msk [vmem:[#allocation2 + $0xe9] sm:$0x1] %vm612_vm3, %v4039_v49  ;;  %641 = vst.msk [vmem:[#allocation2 + $0x101] sm:$0x1] %vm612_vm3, %v4039_v49 }
  0x52   : > { %3119 = vmatprep.mubr.msk.bf16.mxu1 %vm361_vm0, %v344_v42  ;;  %642 = vst.msk [vmem:[#allocation2 + $0x119] sm:$0x1] %vm612_vm3, %v4039_v49  ;;  %643 = vst.msk [vmem:[#allocation2 + $0x131] sm:$0x1] %vm612_vm3, %v4039_v49 }
  0x53   : > { %644 = vst.msk [vmem:[#allocation2 + $0x149] sm:$0x1] %vm612_vm3, %v4039_v49  ;;  %645 = vst.msk [vmem:[#allocation2 + $0x161] sm:$0x1] %vm612_vm3, %v4039_v49 }
  0x54   : > { %646 = vst.msk [vmem:[#allocation2 + $0x179] sm:$0x1] %vm612_vm3, %v4039_v49  ;;  %647 = vst.msk [vmem:[#allocation2 + $0x191] sm:$0x1] %vm612_vm3, %v4039_v49 }
  0x55   : > { %648 = vst.msk [vmem:[#allocation2 + $0x1a9] sm:$0x1] %vm612_vm3, %v4039_v49  ;;  %613 = vst.msk [vmem:[#allocation2] sm:$0x1] %vm612_vm3, %v4039_v49 }
  0x56   : > { %630 = vst.msk [vmem:[#allocation2 + $0x198] sm:$0x1] %vm612_vm3, %v4039_v49 }
  0x58   : > { %3104 = vmatmul.mubr.msk.bf16.gmra.mrb[12].mxu0 %vm361_vm0, %v337_v47 }
  0x59   : > { %3120 = vmatmul.mubr.msk.bf16.gmra.mrb[12].mxu1 %vm361_vm0, %v345_v48 }
 0x113   : > { %v3093_v57 = vpop.f32.mrb[0].mxu0 }
 0x114   : > { %v3109_v58 = vpop.f32.mrb[0].mxu1  ;;  %v453_v59 = vadd.f32 %v3093_v57, %v4302_v56  ;;  %v444_v60 = vpop.f32.mrb[1].mxu0 }
 0x115   : > { %v517_v61 = vadd.f32 %v3109_v58, %v4302_v56  ;;  %v508_v62 = vpop.f32.mrb[1].mxu1  ;;  %v445_v63 = vadd.f32 %v4302_v56, %v444_v60  ;;  %v3094_v0 = vpop.f32.mrb[2].mxu0 }
 0x116   : > { %v509_v1 = vadd.f32 %v4302_v56, %v508_v62  ;;  %v3110_v2 = vpop.f32.mrb[2].mxu1  ;;  %v573_v3 = vmax.f32 %v453_v59, 0.0  ;;  %v456_v4 = vadd.f32 %v3094_v0, %v4302_v56  ;;  %v447_v5 = vpop.f32.mrb[3].mxu0 }
 0x117   : > { %v589_v6 = vmax.f32 %v517_v61, 0.0  ;;  %v520_v7 = vadd.f32 %v3110_v2, %v4302_v56  ;;  %v511_v8 = vpop.f32.mrb[3].mxu1  ;;  %v571_v9 = vmax.f32 %v445_v63, 0.0  ;;  %v448_v10 = vadd.f32 %v4302_v56, %v447_v5 }
 0x118   : > { %v587_v11 = vmax.f32 %v509_v1, 0.0  ;;  %v512_v12 = vadd.f32 %v4302_v56, %v511_v8  ;;  %652 = vst.msk [vmem:[#allocation2 + $0x31] sm:$0xff] %vm603_vm2, %v573_v3  ;;  %v574_v13 = vmax.f32 %v456_v4, 0.0 }
 0x119   : > { %668 = vst.msk [vmem:[#allocation2 + $0xf1] sm:$0xff] %vm603_vm2, %v589_v6  ;;  %v590_v14 = vmax.f32 %v520_v7, 0.0  ;;  %650 = vst.msk [vmem:[#allocation2 + $0x19] sm:$0xff] %vm603_vm2, %v571_v9  ;;  %v572_v15 = vmax.f32 %v448_v10, 0.0 }
 0x11a   : > { %666 = vst.msk [vmem:[#allocation2 + $0xd9] sm:$0xff] %vm603_vm2, %v587_v11  ;;  %v588_v16 = vmax.f32 %v512_v12, 0.0  ;;  %653 = vst.msk [vmem:[#allocation2 + $0x39] sm:$0xff] %vm603_vm2, %v574_v13 }
 0x11b   : > { %669 = vst.msk [vmem:[#allocation2 + $0xf9] sm:$0xff] %vm603_vm2, %v590_v14  ;;  %651 = vst.msk [vmem:[#allocation2 + $0x21] sm:$0xff] %vm603_vm2, %v572_v15  ;;  %v3097_v17 = vpop.f32.mrb[4].mxu0 }
 0x11c   : > { %667 = vst.msk [vmem:[#allocation2 + $0xe1] sm:$0xff] %vm603_vm2, %v588_v16  ;;  %v3113_v18 = vpop.f32.mrb[4].mxu1  ;;  %v469_v19 = vadd.f32 %v3097_v17, %v4302_v56  ;;  %v460_v20 = vpop.f32.mrb[5].mxu0 }
 0x11d   : > { %v533_v21 = vadd.f32 %v3113_v18, %v4302_v56  ;;  %v524_v22 = vpop.f32.mrb[5].mxu1  ;;  %v461_v23 = vadd.f32 %v4302_v56, %v460_v20  ;;  %v3098_v24 = vpop.f32.mrb[6].mxu0 }
 0x11e   : > { %v525_v25 = vadd.f32 %v4302_v56, %v524_v22  ;;  %v3114_v26 = vpop.f32.mrb[6].mxu1  ;;  %v577_v27 = vmax.f32 %v469_v19, 0.0  ;;  %v472_v28 = vadd.f32 %v3098_v24, %v4302_v56  ;;  %v463_v29 = vpop.f32.mrb[7].mxu0 }
 0x11f   : > { %v593_v30 = vmax.f32 %v533_v21, 0.0  ;;  %v536_v31 = vadd.f32 %v3114_v26, %v4302_v56  ;;  %v527_v32 = vpop.f32.mrb[7].mxu1  ;;  %v575_v33 = vmax.f32 %v461_v23, 0.0  ;;  %v464_v34 = vadd.f32 %v4302_v56, %v463_v29  ;;  %v4330_v39 = vld [vmem:[#allocation2 + $0x30] sm:$0xff] }
 0x120   : > { %v591_v35 = vmax.f32 %v525_v25, 0.0  ;;  %v528_v36 = vadd.f32 %v4302_v56, %v527_v32  ;;  %656 = vst.msk [vmem:[#allocation2 + $0x61] sm:$0xff] %vm603_vm2, %v577_v27  ;;  %v578_v37 = vmax.f32 %v472_v28, 0.0  ;;  %v907_v51 = vld [vmem:[#allocation2 + $0x31] sm:$0xff]  ;;  %v716_v23 = vld [vmem:[#allocation2 + $0x19] sm:$0xff] }
 0x121   : > { %672 = vst.msk [vmem:[#allocation2 + $0x121] sm:$0xff] %vm603_vm2, %v593_v30  ;;  %v594_v38 = vmax.f32 %v536_v31, 0.0  ;;  %v4332_v40 = vld [vmem:[#allocation2 + $0x38] sm:$0xff]  ;;  %654 = vst.msk [vmem:[#allocation2 + $0x49] sm:$0xff] %vm603_vm2, %v575_v33  ;;  %v576_v41 = vmax.f32 %v464_v34, 0.0  ;;  %v891_v11 = vld [vmem:[#allocation2 + $0xf0] sm:$0xff] }
 0x122   : > { %670 = vst.msk [vmem:[#allocation2 + $0x109] sm:$0xff] %vm603_vm2, %v591_v35  ;;  %v592_v42 = vmax.f32 %v528_v36, 0.0  ;;  %v3282_v43 = vpack.i.bf16 %v4332_v40, %v4330_v39  ;;  %657 = vst.msk [vmem:[#allocation2 + $0x69] sm:$0xff] %vm603_vm2, %v578_v37  ;;  %v908_v44 = vld [vmem:[#allocation2 + $0x39] sm:$0xff]  ;;  %v923_v14 = vld [vmem:[#allocation2 + $0xf1] sm:$0xff] }
 0x123   : > { %673 = vst.msk [vmem:[#allocation2 + $0x129] sm:$0xff] %vm603_vm2, %v594_v38  ;;  %655 = vst.msk [vmem:[#allocation2 + $0x51] sm:$0xff] %vm603_vm2, %v576_v41  ;;  %v3101_v45 = vpop.f32.mrb[8].mxu0  ;;  %v3287_v55 = vpack.i.bf16 %v908_v44, %v907_v51  ;;  %v939_v61 = vld [vmem:[#allocation2 + $0x32] sm:$0xff]  ;;  %v940_v62 = vld [vmem:[#allocation2 + $0x3a] sm:$0xff] }
 0x124   : > { %671 = vst.msk [vmem:[#allocation2 + $0x111] sm:$0xff] %vm603_vm2, %v592_v42  ;;  %v3117_v46 = vpop.f32.mrb[8].mxu1  ;;  %3283 = vrot.lane.b32.xlu0 %v3282_v43, %s4042_s21  ;;  %3268 = vrot.lane.b32.xlu1 %v3282_v43, %s4043_s9  ;;  %v485_v47 = vadd.f32 %v3101_v45, %v4302_v56  ;;  %v476_v48 = vpop.f32.mrb[9].mxu0  ;;  %v3292_v7 = vpack.i.bf16 %v940_v62, %v939_v61  ;;  %v4364_v12 = vld [vmem:[#allocation2 + $0xf8] sm:$0xff]  ;;  %v749_v21 = vld [vmem:[#allocation2 + $0x22] sm:$0xff] }
 0x125   : > { %v549_v49 = vadd.f32 %v3117_v46, %v4302_v56  ;;  %v540_v50 = vpop.f32.mrb[9].mxu1  ;;  %v477_v52 = vadd.f32 %v4302_v56, %v476_v48  ;;  %v3102_v53 = vpop.f32.mrb[10].mxu0  ;;  %v3322_v13 = vpack.i.bf16 %v4364_v12, %v891_v11  ;;  %v924_v15 = vld [vmem:[#allocation2 + $0xf9] sm:$0xff]  ;;  %v717_v22 = vld [vmem:[#allocation2 + $0x21] sm:$0xff] }
 0x126   : > { %v3118_v54 = vpop.f32.mrb[10].mxu1  ;;  %v581_v57 = vmax.f32 %v485_v47, 0.0  ;;  %v488_v58 = vadd.f32 %v3102_v53, %v4302_v56  ;;  %v479_v59 = vpop.f32.mrb[11].mxu0  ;;  %v541_v3 = vadd.f32 %v4302_v56, %v540_v50  ;;  %v3327_v16 = vpack.i.bf16 %v924_v15, %v923_v14  ;;  %v955_v17 = vld [vmem:[#allocation2 + $0xf2] sm:$0xff]  ;;  %v956_v18 = vld [vmem:[#allocation2 + $0xfa] sm:$0xff]  ;;  %v765_v50 = vld [vmem:[#allocation2 + $0xe2] sm:$0xff] }
 0x127   : > { %v597_v60 = vmax.f32 %v549_v49, 0.0  ;;  %v579_v63 = vmax.f32 %v477_v52, 0.0  ;;  %v480_v0 = vadd.f32 %v4302_v56, %v479_v59  ;;  %v543_v1 = vpop.f32.mrb[11].mxu1  ;;  %v552_v4 = vadd.f32 %v3118_v54, %v4302_v56  ;;  %v748_v20 = vld [vmem:[#allocation2 + $0x1a] sm:$0xff] }
 0x128   : > { %3288 = vrot.lane.b32.xlu0 %v3287_v55, %s4044_s8  ;;  %3273 = vrot.lane.b32.xlu1 %v3287_v55, %s4045_s11  ;;  %660 = vst.msk [vmem:[#allocation2 + $0x91] sm:$0xff] %vm603_vm2, %v581_v57  ;;  %v582_v2 = vmax.f32 %v488_v58, 0.0  ;;  %v544_v5 = vadd.f32 %v4302_v56, %v543_v1  ;;  %v595_v8 = vmax.f32 %v541_v3, 0.0  ;;  %v3332_v19 = vpack.i.bf16 %v956_v18, %v955_v17  ;;  %v4378_v29 = vld [vmem:[#allocation2 + $0xd8] sm:$0xff]  ;;  %v4380_v30 = vld [vmem:[#allocation2 + $0xe0] sm:$0xff] }
 0x129   : > { %676 = vst.msk [vmem:[#allocation2 + $0x151] sm:$0xff] %vm603_vm2, %v597_v60  ;;  %658 = vst.msk [vmem:[#allocation2 + $0x79] sm:$0xff] %vm603_vm2, %v579_v63  ;;  %v580_v6 = vmax.f32 %v480_v0, 0.0  ;;  %v598_v9 = vmax.f32 %v552_v4, 0.0  ;;  %v3352_v25 = vpack.i.bf16 %v749_v21, %v748_v20  ;;  %v3347_v26 = vpack.i.bf16 %v717_v22, %v716_v23  ;;  %v4382_v31 = vld [vmem:[#allocation2 + $0x20] sm:$0xff]  ;;  %v4387_v34 = vld [vmem:[#allocation2 + $0x18] sm:$0xff] }
 0x12a   : > { %661 = vst.msk [vmem:[#allocation2 + $0x99] sm:$0xff] %vm603_vm2, %v582_v2  ;;  %v596_v10 = vmax.f32 %v544_v5, 0.0  ;;  %674 = vst.msk [vmem:[#allocation2 + $0x139] sm:$0xff] %vm603_vm2, %v595_v8  ;;  %v3372_v36 = vpack.i.bf16 %v4380_v30, %v4378_v29  ;;  %v3357_v37 = vpack.i.bf16 %v4382_v31, %v4387_v34  ;;  %v921_v41 = vld [vmem:[#allocation2 + $0xd9] sm:$0xff]  ;;  %v922_v42 = vld [vmem:[#allocation2 + $0xe1] sm:$0xff] }
 0x12b   : > { %659 = vst.msk [vmem:[#allocation2 + $0x81] sm:$0xff] %vm603_vm2, %v580_v6  ;;  %677 = vst.msk [vmem:[#allocation2 + $0x159] sm:$0xff] %vm603_vm2, %v598_v9  ;;  %v3105_v24 = vpop.f32.mrb[12].mxu0  ;;  %v3377_v47 = vpack.i.bf16 %v922_v42, %v921_v41  ;;  %v764_v49 = vld [vmem:[#allocation2 + $0xda] sm:$0xff]  ;;  %v4407_v52 = vld [vmem:[#allocation2 + $0x68] sm:$0xff] }
 0x12c   : > { %3293 = vrot.lane.b32.xlu0 %v3292_v7, %s4046_s18  ;;  %3278 = vrot.lane.b32.xlu1 %v3292_v7, %s4047_s20  ;;  %675 = vst.msk [vmem:[#allocation2 + $0x141] sm:$0xff] %vm603_vm2, %v596_v10  ;;  %v501_v27 = vadd.f32 %v3105_v24, %v4302_v56  ;;  %v492_v28 = vpop.f32.mrb[13].mxu0  ;;  %v4405_v51 = vld [vmem:[#allocation2 + $0x60] sm:$0xff]  ;;  %v3392_v53 = vpack.i.bf16 %v765_v50, %v764_v49  ;;  %v817_v57 = vld [vmem:[#allocation2 + $0x69] sm:$0xff]  ;;  %v3121_v1 = vpop.f32.mrb[12].mxu1  ;;  %v926_v42 = vld [vmem:[#allocation2 + $0x111] sm:$0xff] }
 0x12d   : > { %v493_v32 = vadd.f32 %v4302_v56, %v492_v28  ;;  %v3106_v38 = vpop.f32.mrb[14].mxu0  ;;  %v3412_v54 = vpack.i.bf16 %v4407_v52, %v4405_v51  ;;  %v848_v59 = vld [vmem:[#allocation2 + $0x62] sm:$0xff]  ;;  %v849_v60 = vld [vmem:[#allocation2 + $0x6a] sm:$0xff]  ;;  %v565_v2 = vadd.f32 %v3121_v1, %v4302_v56  ;;  %v556_v3 = vpop.f32.mrb[13].mxu1 }
 0x12e   : > { %v585_v33 = vmax.f32 %v501_v27, 0.0  ;;  %v504_v43 = vadd.f32 %v3106_v38, %v4302_v56  ;;  %v495_v44 = vpop.f32.mrb[15].mxu0  ;;  %v3422_v61 = vpack.i.bf16 %v849_v60, %v848_v59  ;;  %v4419_v62 = vld [vmem:[#allocation2 + $0x120] sm:$0xff]  ;;  %v4421_v63 = vld [vmem:[#allocation2 + $0x128] sm:$0xff]  ;;  %v557_v6 = vadd.f32 %v4302_v56, %v556_v3  ;;  %v3122_v9 = vpop.f32.mrb[14].mxu1  ;;  %v878_v21 = vld [vmem:[#allocation2 + $0x50] sm:$0xff] }
 0x12f   : > { %v583_v35 = vmax.f32 %v493_v32, 0.0  ;;  %v496_v45 = vadd.f32 %v4302_v56, %v495_v44  ;;  %v3452_v0 = vpack.i.bf16 %v4421_v63, %v4419_v62  ;;  %v832_v4 = vld [vmem:[#allocation2 + $0x121] sm:$0xff]  ;;  %v833_v5 = vld [vmem:[#allocation2 + $0x129] sm:$0xff]  ;;  %v568_v11 = vadd.f32 %v3122_v9, %v4302_v56 }
 0x130   : > { %3303 = vrot.lane.b32.xlu0 %v3292_v7, %s4040_s12  ;;  %3298 = vrot.lane.b32.xlu1 %v3287_v55, %s4041_s23  ;;  %664 = vst.msk [vmem:[#allocation2 + $0xc1] sm:$0xff] %vm603_vm2, %v585_v33  ;;  %v586_v46 = vmax.f32 %v504_v43, 0.0  ;;  %v816_v55 = vld [vmem:[#allocation2 + $0x61] sm:$0xff]  ;;  %v601_v7 = vmax.f32 %v565_v2, 0.0  ;;  %v599_v8 = vmax.f32 %v557_v6, 0.0  ;;  %v3457_v10 = vpack.i.bf16 %v833_v5, %v832_v4  ;;  %v865_v15 = vld [vmem:[#allocation2 + $0x12a] sm:$0xff] }
 0x131   : > { %662 = vst.msk [vmem:[#allocation2 + $0xa9] sm:$0xff] %vm603_vm2, %v583_v35  ;;  %v584_v48 = vmax.f32 %v496_v45, 0.0  ;;  %v3417_v58 = vpack.i.bf16 %v817_v57, %v816_v55  ;;  %v864_v14 = vld [vmem:[#allocation2 + $0x122] sm:$0xff]  ;;  %v602_v17 = vmax.f32 %v568_v11, 0.0  ;;  %v752_v32 = vld [vmem:[#allocation2 + $0x4a] sm:$0xff]  ;;  %v753_v33 = vld [vmem:[#allocation2 + $0x52] sm:$0xff] }
 0x132   : > { %665 = vst.msk [vmem:[#allocation2 + $0xc9] sm:$0xff] %vm603_vm2, %v586_v46  ;;  %680 = vst.msk [vmem:[#allocation2 + $0x181] sm:$0xff] %vm603_vm2, %v601_v7  ;;  %v3898_v20 = vld [vmem:[%s5504_s2] sm:$0xff]   ;;  %v3899_v22 = vld [vmem:[%s5504_s2 + $0x8] sm:$0xff]   ;;  %v3512_v35 = vpack.i.bf16 %v753_v33, %v752_v32  ;;  %v4468_v46 = vpop.permute.xlu1 %3263 }
 0x133   : > { %663 = vst.msk [vmem:[#allocation2 + $0xb1] sm:$0xff] %vm603_vm2, %v584_v48  ;;  %678 = vst.msk [vmem:[#allocation2 + $0x169] sm:$0xff] %vm603_vm2, %v599_v8  ;;  %3123 = vmatprep.subr.bf16.mxu1 %v3898_v20  ;;  %v909_v24 = vld [vmem:[#allocation2 + $0x49] sm:$0xff]  ;;  %v769_v45 = vld [vmem:[#allocation2 + $0x112] sm:$0xff] }
 0x134   : > { %3323 = vrot.lane.b32.xlu0 %v3322_v13, %s4042_s21  ;;  %3308 = vrot.lane.b32.xlu1 %v3322_v13, %s4043_s9  ;;  %v559_v13 = vpop.f32.mrb[15].mxu1  ;;  %681 = vst.msk [vmem:[#allocation2 + $0x189] sm:$0xff] %vm603_vm2, %v602_v17  ;;  %v3900_v27 = vld [vmem:[%s5504_s2 + $0x10] ss:$0 sps:$4 sm:$0x33]   ;;  %v789_v49 = vld [vmem:[#allocation2 + $0x98] sm:$0xff] }
 0x135   : > { %3124 = vmatpush3.bf16.msra.mxu1 %v3898_v20  ;;  %v2351_v28 = vsel %vm2349_vm4, %v3900_v27, 0  ;;  %v925_v41 = vld [vmem:[#allocation2 + $0x109] sm:$0xff]  ;;  %v820_v57 = vld [vmem:[#allocation2 + $0x91] sm:$0xff]  ;;  %v853_v1 = vld [vmem:[#allocation2 + $0x9a] sm:$0xff] }
 0x136   : > { %3125 = vmatprep.subr.bf16.mxu1 %v3899_v22  ;;  %v3537_v43 = vpack.i.bf16 %v926_v42, %v925_v41  ;;  %v768_v44 = vld [vmem:[#allocation2 + $0x10a] sm:$0xff]  ;;  %v805_v6 = vld [vmem:[#allocation2 + $0x158] sm:$0xff] }
 0x137   : > { %v788_v48 = vld [vmem:[#allocation2 + $0x90] sm:$0xff]  ;;  %v3552_v50 = vpack.i.bf16 %v769_v45, %v768_v44  ;;  %v683_v45 = vld [vmem:[#allocation2 + $0x8] sm:$0xff] }
 0x138   : > { %3328 = vrot.lane.b32.xlu0 %v3327_v16, %s4044_s8  ;;  %3313 = vrot.lane.b32.xlu1 %v3327_v16, %s4045_s11  ;;  %v804_v5 = vld [vmem:[#allocation2 + $0x150] sm:$0xff] }
 0x139   : > { %3126 = vmatpush3.bf16.msra.mxu1 %v3899_v22  ;;  %v3612_v9 = vpack.i.bf16 %v805_v6, %v804_v5  ;;  %v881_v22 = vld [vmem:[#allocation2 + $0x78] sm:$0xff]  ;;  %v930_v6 = vld [vmem:[#allocation2 + $0x141] sm:$0xff] }
 0x13a   : > { %3197 = vmatprep.subr.msk.bf16.mxu1 %vm2349_vm4, %v3900_v27  ;;  %v913_v27 = vld [vmem:[#allocation2 + $0x79] sm:$0xff] }
 0x13b   : > { %v929_v5 = vld [vmem:[#allocation2 + $0x139] sm:$0xff] }
 0x13c   : > { %3333 = vrot.lane.b32.xlu0 %v3332_v19, %s4046_s18  ;;  %3318 = vrot.lane.b32.xlu1 %v3332_v19, %s4047_s20 }
 0x13d   : > { %3128 = vmatpush3.bf16.msra.mxu1 %v2351_v28  ;;  %v914_v28 = vld [vmem:[#allocation2 + $0x81] sm:$0xff] }
 0x140   : > { %3343 = vrot.lane.b32.xlu0 %v3332_v19, %s4040_s12  ;;  %3338 = vrot.lane.b32.xlu1 %v3327_v16, %s4041_s23  ;;  %v560_v16 = vadd.f32 %v4302_v56, %v559_v13  ;;  %v3462_v19 = vpack.i.bf16 %v865_v15, %v864_v14  ;;  %v877_v56 = vld [vmem:[#allocation2 + $0x48] sm:$0xff]  ;;  %v836_v13 = vld [vmem:[#allocation2 + $0x151] sm:$0xff]  ;;  %v837_v14 = vld [vmem:[#allocation2 + $0x159] sm:$0xff] }
 0x141   : > { %v3492_v23 = vpack.i.bf16 %v878_v21, %v877_v56  ;;  %v4508_v17 = vpack.i.bf16 %v837_v14, %v836_v13 }
 0x142   : > { %v600_v18 = vmax.f32 %v560_v16, 0.0 }
 0x144   : > { %3353 = vrot.lane.b32.xlu1 %v3352_v25, %s4040_s12  ;;  %3348 = vrot.lane.b32.xlu0 %v3347_v26, %s4041_s23  ;;  %679 = vst.msk [vmem:[#allocation2 + $0x171] sm:$0xff] %vm603_vm2, %v600_v18  ;;  %v868_v18 = vld [vmem:[#allocation2 + $0x152] sm:$0xff] }
 0x148   : > { %3373 = vrot.lane.b32.xlu1 %v3372_v36, %s4042_s21  ;;  %3358 = vrot.lane.b32.xlu0 %v3357_v37, %s4043_s9  ;;  %v894_v37 = vld [vmem:[#allocation2 + $0x110] sm:$0xff] }
 0x14c   : > { %3378 = vrot.lane.b32.xlu1 %v3377_v47, %s4044_s8  ;;  %3363 = vrot.lane.b32.xlu0 %v3347_v26, %s4045_s11 }
 0x150   : > { %3388 = vrot.lane.b32.xlu1 %v3377_v47, %s4041_s23  ;;  %3368 = vrot.lane.b32.xlu0 %v3352_v25, %s4047_s20  ;;  %v910_v25 = vld [vmem:[#allocation2 + $0x51] sm:$0xff] }
 0x151   : > { %v3497_v26 = vpack.i.bf16 %v910_v25, %v909_v24 }
 0x154   : > { %3393 = vrot.lane.b32.xlu1 %v3392_v53, %s4040_s12  ;;  %3383 = vrot.lane.b32.xlu0 %v3392_v53, %s4046_s18 }
 0x158   : > { %3413 = vrot.lane.b32.xlu1 %v3412_v54, %s4043_s9  ;;  %3398 = vrot.lane.b32.xlu0 %v3372_v36, %s4043_s9  ;;  %v893_v36 = vld [vmem:[#allocation2 + $0x108] sm:$0xff] }
 0x159   : > { %v3532_v38 = vpack.i.bf16 %v894_v37, %v893_v36  ;;  %v945_v36 = vld [vmem:[#allocation2 + $0x7a] sm:$0xff]  ;;  %v946_v37 = vld [vmem:[#allocation2 + $0x82] sm:$0xff] }
 0x15a   : > { %v3647_v44 = vpack.i.bf16 %v946_v37, %v945_v36 }
 0x15c   : > { %3418 = vrot.lane.b32.xlu1 %v3417_v58, %s4045_s11  ;;  %3403 = vrot.lane.b32.xlu0 %v3377_v47, %s4045_s11  ;;  %v4470_v47 = vpop.permute.xlu0 %3258 }
 0x15d   : > { %v3260_v41 = vunpack.i.l.bf16 %v4470_v47 }
 0x160   : > { %3423 = vrot.lane.b32.xlu1 %v3422_v61, %s4047_s20  ;;  %3408 = vrot.lane.b32.xlu0 %v3392_v53, %s4047_s20  ;;  %v3572_v53 = vpack.i.bf16 %v789_v49, %v788_v48  ;;  %v682_v48 = vld [vmem:[#allocation2] sm:$0xff]  ;;  %v3266_v49 = vunpack.i.h.bf16 %v4468_v46 }
 0x164   : > { %3443 = vrot.lane.b32.xlu1 %v3417_v58, %s4041_s23  ;;  %3428 = vrot.lane.b32.xlu0 %v3412_v54, %s4042_s21 }
 0x168   : > { %3453 = vrot.lane.b32.xlu1 %v3452_v0, %s4043_s9  ;;  %3433 = vrot.lane.b32.xlu0 %v3417_v58, %s4044_s8  ;;  %v821_v58 = vld [vmem:[#allocation2 + $0x99] sm:$0xff] }
 0x16c   : > { %3458 = vrot.lane.b32.xlu1 %v3457_v10, %s4045_s11  ;;  %3438 = vrot.lane.b32.xlu0 %v3422_v61, %s4046_s18 }
 0x170   : > { %3463 = vrot.lane.b32.xlu1 %v3462_v19, %s4047_s20  ;;  %3448 = vrot.lane.b32.xlu0 %v3422_v61, %s4040_s12  ;;  %v3577_v61 = vpack.i.bf16 %v821_v58, %v820_v57  ;;  %v1995_v57 = vsel %vm603_vm2, %v682_v48, %v3260_v41 }
 0x174   : > { %3483 = vrot.lane.b32.xlu1 %v3457_v10, %s4041_s23  ;;  %3468 = vrot.lane.b32.xlu0 %v3452_v0, %s4042_s21  ;;  %v852_v0 = vld [vmem:[#allocation2 + $0x92] sm:$0xff] }
 0x175   : > { %v3582_v4 = vpack.i.bf16 %v853_v1, %v852_v0  ;;  %v898_v0 = vld [vmem:[#allocation2 + $0x140] sm:$0xff] }
 0x178   : > { %3493 = vrot.lane.b32.xlu1 %v3492_v23, %s4042_s21  ;;  %3473 = vrot.lane.b32.xlu0 %v3457_v10, %s4044_s8 }
 0x17c   : > { %3498 = vrot.lane.b32.xlu1 %v3497_v26, %s4044_s8  ;;  %3478 = vrot.lane.b32.xlu0 %v3462_v19, %s4046_s18 }
 0x180   : > { %3508 = vrot.lane.b32.xlu1 %v3497_v26, %s4041_s23  ;;  %3488 = vrot.lane.b32.xlu0 %v3462_v19, %s4040_s12  ;;  %v869_v19 = vld [vmem:[#allocation2 + $0x15a] sm:$0xff] }
 0x181   : > { %v4517_v21 = vpack.i.bf16 %v869_v19, %v868_v18 }
 0x184   : > { %3513 = vrot.lane.b32.xlu1 %v3512_v35, %s4040_s12  ;;  %3503 = vrot.lane.b32.xlu0 %v3512_v35, %s4046_s18 }
 0x188   : > { %3533 = vrot.lane.b32.xlu1 %v3532_v38, %s4042_s21  ;;  %3518 = vrot.lane.b32.xlu0 %v3492_v23, %s4043_s9  ;;  %v882_v23 = vld [vmem:[#allocation2 + $0x80] sm:$0xff] }
 0x18c   : > { %3538 = vrot.lane.b32.xlu1 %v3537_v43, %s4044_s8  ;;  %3523 = vrot.lane.b32.xlu0 %v3497_v26, %s4045_s11  ;;  %v3637_v26 = vpack.i.bf16 %v882_v23, %v881_v22  ;;  %v3682_v23 = vpack.i.bf16 %v930_v6, %v929_v5 }
 0x190   : > { %3548 = vrot.lane.b32.xlu1 %v3537_v43, %s4041_s23  ;;  %3528 = vrot.lane.b32.xlu0 %v3512_v35, %s4047_s20  ;;  %v3642_v35 = vpack.i.bf16 %v914_v28, %v913_v27 }
 0x194   : > { %3553 = vrot.lane.b32.xlu1 %v3552_v50, %s4040_s12  ;;  %3543 = vrot.lane.b32.xlu0 %v3552_v50, %s4046_s18 }
 0x196   : > { %v4474_v54 = vpop.permute.xlu0 %3283  ;;  %v4476_v55 = vpop.permute.xlu1 %3268 }
 0x198   : > { %3573 = vrot.lane.b32.xlu1 %v3572_v53, %s4043_s9  ;;  %3558 = vrot.lane.b32.xlu0 %v3532_v38, %s4043_s9  ;;  %v3261_v38 = vunpack.i.h.bf16 %v4470_v47 }
 0x19a   : > { %v4480_v59 = vpop.permute.xlu0 %3288  ;;  %v4482_v60 = vpop.permute.xlu1 %3273 }
 0x19c   : > { %3578 = vrot.lane.b32.xlu1 %v3577_v61, %s4045_s11  ;;  %3563 = vrot.lane.b32.xlu0 %v3537_v43, %s4045_s11 }
 0x19e   : > { %v4486_v2 = vpop.permute.xlu0 %3293  ;;  %v4488_v3 = vpop.permute.xlu1 %3278 }
 0x1a0   : > { %3583 = vrot.lane.b32.xlu1 %v3582_v4, %s4047_s20  ;;  %3568 = vrot.lane.b32.xlu0 %v3552_v50, %s4047_s20  ;;  %v3265_v50 = vunpack.i.l.bf16 %v4468_v46 }
 0x1a2   : > { %v4492_v7 = vpop.permute.xlu0 %3303  ;;  %v4494_v8 = vpop.permute.xlu1 %3298  ;;  %v2028_v46 = vsel %vm2027_vm5, %v1995_v57, %v3265_v50  ;;  %v3290_v50 = vunpack.i.l.bf16 %v4480_v59 }
 0x1a4   : > { %3603 = vrot.lane.b32.xlu1 %v3577_v61, %s4041_s23  ;;  %3588 = vrot.lane.b32.xlu0 %v3572_v53, %s4042_s21  ;;  %v1996_v53 = vsel %vm603_vm2, %v683_v45, %v3261_v38  ;;  %v3285_v38 = vunpack.i.l.bf16 %v4474_v54 }
 0x1a5   : > { %v2029_v14 = vsel %vm2027_vm5, %v1996_v53, %v3266_v49  ;;  %v3291_v49 = vunpack.i.h.bf16 %v4480_v59 }
 0x1a6   : > { %v4498_v10 = vpop.permute.xlu0 %3323  ;;  %v4500_v11 = vpop.permute.xlu1 %3308 }
 0x1a7   : > { %5526 = vst [vmem:[#allocation9_spill] sm:$0xff] %v4498_v10 }
 0x1a8   : > { %3613 = vrot.lane.b32.xlu1 %v3612_v9, %s4043_s9  ;;  %3593 = vrot.lane.b32.xlu0 %v3577_v61, %s4044_s8  ;;  %v897_v61 = vld [vmem:[#allocation2 + $0x138] sm:$0xff] }
 0x1a9   : > { %v3677_v18 = vpack.i.bf16 %v898_v0, %v897_v61  ;;  %v3295_v61 = vunpack.i.l.bf16 %v4486_v2 }
 0x1aa   : > { %v4504_v15 = vpop.permute.xlu0 %3328  ;;  %v4506_v16 = vpop.permute.xlu1 %3313 }
 0x1ab   : > { %5527 = vst [vmem:[#allocation10_spill] sm:$0xff] %v4504_v15  ;;  %v966_v15 = vld [vmem:[#allocation2 + $0x172] sm:$0xff] }
 0x1ac   : > { %3618 = vrot.lane.b32.xlu1 %v4508_v17, %s4045_s11  ;;  %3598 = vrot.lane.b32.xlu0 %v3582_v4, %s4046_s18 }
 0x1ae   : > { %v4513_v20 = vpop.permute.xlu0 %3333  ;;  %v4515_v56 = vpop.permute.xlu1 %3318 }
 0x1af   : > { %5528 = vst [vmem:[#allocation11_spill] sm:$0xff] %v4513_v20  ;;  %v3300_v20 = vunpack.i.l.bf16 %v4494_v8 }
 0x1b0   : > { %3623 = vrot.lane.b32.xlu1 %v4517_v21, %s4047_s20  ;;  %3608 = vrot.lane.b32.xlu0 %v3582_v4, %s4040_s12 }
 0x1b2   : > { %v4522_v24 = vpop.permute.xlu0 %3343  ;;  %v4524_v25 = vpop.permute.xlu1 %3338 }
 0x1b4   : > { %3638 = vrot.lane.b32.xlu1 %v3637_v26, %s4042_s21  ;;  %3628 = vrot.lane.b32.xlu0 %v3612_v9, %s4042_s21 }
 0x1b6   : > { %v4528_v32 = vpop.permute.xlu1 %3353  ;;  %v4530_v33 = vpop.permute.xlu0 %3348 }
 0x1b8   : > { %3643 = vrot.lane.b32.xlu1 %v3642_v35, %s4044_s8  ;;  %3633 = vrot.lane.b32.xlu0 %v4508_v17, %s4044_s8 }
 0x1ba   : > { %v4537_v42 = vpop.permute.xlu1 %3373  ;;  %v3359_v43 = vpop.permute.xlu0 %3358 }
 0x1bb   : > { %5529 = vst [vmem:[#allocation12_spill] sm:$0xff] %v4537_v42  ;;  %v3361_v1 = vunpack.i.h.bf16 %v3359_v43  ;;  %v3360_v4 = vunpack.i.l.bf16 %v3359_v43  ;;  %v3301_v42 = vunpack.i.h.bf16 %v4494_v8 }
 0x1bc   : > { %3653 = vrot.lane.b32.xlu1 %v3642_v35, %s4041_s23  ;;  %3648 = vrot.lane.b32.xlu0 %v3647_v44, %s4046_s18 }
 0x1bd   : > { %v2062_v27 = vsel %vm2060_vm6, %v2029_v14, %v3361_v1  ;;  %v2061_v28 = vsel %vm2060_vm6, %v2028_v46, %v3360_v4  ;;  %v961_v1 = vld [vmem:[#allocation2 + $0x13a] sm:$0xff]  ;;  %v962_v4 = vld [vmem:[#allocation2 + $0x142] sm:$0xff] }
 0x1be   : > { %v4545_v47 = vpop.permute.xlu1 %3378  ;;  %v3364_v58 = vpop.permute.xlu0 %3363  ;;  %v3687_v46 = vpack.i.bf16 %v962_v4, %v961_v1  ;;  %v793_v14 = vld [vmem:[#allocation2 + $0xc8] sm:$0xff]  ;;  %v3351_v1 = vunpack.i.h.bf16 %v4530_v33  ;;  %v3350_v4 = vunpack.i.l.bf16 %v4530_v33  ;;  %v3355_v33 = vunpack.i.l.bf16 %v4528_v32 }
 0x1bf   : > { %5530 = vst [vmem:[#allocation13_spill] sm:$0xff] %v4545_v47  ;;  %v3366_v9 = vunpack.i.h.bf16 %v3364_v58  ;;  %v3365_v13 = vunpack.i.l.bf16 %v3364_v58 }
 0x1c0   : > { %3658 = vrot.lane.b32.xlu1 %v3647_v44, %s4040_s12  ;;  %3663 = vrot.lane.b32.xlu0 %v3637_v26, %s4043_s9  ;;  %v3286_v26 = vunpack.i.h.bf16 %v4474_v54  ;;  %v1998_v47 = vsel %vm603_vm2, %v4382_v31, %v3351_v1 }
 0x1c1   : > { %v2093_v41 = vsel %vm361_vm0, %v2061_v28, %v3365_v13  ;;  %v2094_v43 = vsel %vm361_vm0, %v2062_v27, %v3366_v9 }
 0x1c2   : > { %v4551_v19 = vpop.permute.xlu1 %3388  ;;  %v3369_v22 = vpop.permute.xlu0 %3368 }
 0x1c3   : > { %v3371_v36 = vunpack.i.h.bf16 %v3369_v22  ;;  %v3370_v37 = vunpack.i.l.bf16 %v3369_v22 }
 0x1c4   : > { %3678 = vrot.lane.b32.xlu1 %v3677_v18, %s4042_s21  ;;  %3668 = vrot.lane.b32.xlu0 %v3642_v35, %s4045_s11  ;;  %v3296_v35 = vunpack.i.h.bf16 %v4486_v2 }
 0x1c5   : > { %v2126_v45 = vsel %vm2125_vm7, %v2093_v41, %v3370_v37  ;;  %v2127_v48 = vsel %vm2125_vm7, %v2094_v43, %v3371_v36 }
 0x1c6   : > { %v2159_v54 = vsel %vm2158_vm8, %v2126_v45, %v3285_v38  ;;  %v2160_v53 = vsel %vm2158_vm8, %v2127_v48, %v3286_v26  ;;  %v4567_v57 = vpop.permute.xlu1 %3393  ;;  %v4569_v58 = vpop.permute.xlu0 %3383  ;;  %v824_v26 = vld [vmem:[#allocation2 + $0xc1] sm:$0xff]  ;;  %v825_v38 = vld [vmem:[#allocation2 + $0xc9] sm:$0xff] }
 0x1c7   : > { %5531 = vst [vmem:[#allocation14_spill] sm:$0xff] %v4569_v58  ;;  %v2192_v0 = vsel %vm2191_vm9, %v2159_v54, %v3290_v50  ;;  %v2193_v59 = vsel %vm2191_vm9, %v2160_v53, %v3291_v49  ;;  %v3722_v45 = vpack.i.bf16 %v825_v38, %v824_v26  ;;  %v856_v48 = vld [vmem:[#allocation2 + $0xc2] sm:$0xff]  ;;  %v857_v49 = vld [vmem:[#allocation2 + $0xca] sm:$0xff] }
 0x1c8   : > { %3683 = vrot.lane.b32.xlu1 %v3682_v23, %s4044_s8  ;;  %3673 = vrot.lane.b32.xlu0 %v3647_v44, %s4047_s20  ;;  %v2225_v5 = vsel %vm2224_vm10, %v2192_v0, %v3295_v61  ;;  %v2226_v6 = vsel %vm2224_vm10, %v2193_v59, %v3296_v35  ;;  %v792_v44 = vld [vmem:[#allocation2 + $0xc0] sm:$0xff]  ;;  %v4606_v54 = vpack.i.bf16 %v857_v49, %v856_v48  ;;  %v885_v35 = vld [vmem:[#allocation2 + $0xa8] sm:$0xff]  ;;  %v886_v61 = vld [vmem:[#allocation2 + $0xb0] sm:$0xff] }
 0x1c9   : > { %v2257_v2 = vpack.c.bf16 %v2226_v6, %v2225_v5  ;;  %v3717_v28 = vpack.i.bf16 %v793_v14, %v792_v44  ;;  %v917_v5 = vld [vmem:[#allocation2 + $0xa9] sm:$0xff]  ;;  %v918_v6 = vld [vmem:[#allocation2 + $0xb1] sm:$0xff]  ;;  %v4621_v44 = vpack.i.bf16 %v886_v61, %v885_v35  ;;  %v808_v26 = vld [vmem:[#allocation2 + $0x180] sm:$0xff] }
 0x1ca   : > { %v4579_v9 = vpop.permute.xlu1 %3413  ;;  %v4581_v13 = vpop.permute.xlu0 %3398  ;;  %v949_v14 = vld [vmem:[#allocation2 + $0xaa] sm:$0xff]  ;;  %v840_v49 = vld [vmem:[#allocation2 + $0x181] sm:$0xff]  ;;  %v4649_v31 = vpack.i.bf16 %v918_v6, %v917_v5 }
 0x1cb   : > { %5532 = vst [vmem:[#allocation15_spill] sm:$0xff] %v4581_v13  ;;  %3129 = vmatprep.mubr.msk.bf16.mxu1 %vm2300_vm11, %v2257_v2  ;;  %v809_v48 = vld [vmem:[#allocation2 + $0x188] sm:$0xff]  ;;  %v4665_v5 = vld [vmem:[#allocation2 + $0x1a0] sm:$0xff] }
 0x1cc   : > { %3693 = vrot.lane.b32.xlu1 %v3682_v23, %s4041_s23  ;;  %3688 = vrot.lane.b32.xlu0 %v3687_v46, %s4046_s18  ;;  %v841_v58 = vld [vmem:[#allocation2 + $0x189] sm:$0xff] }
 0x1cd   : > { %v872_v35 = vld [vmem:[#allocation2 + $0x182] sm:$0xff]  ;;  %v873_v61 = vld [vmem:[#allocation2 + $0x18a] sm:$0xff] }
 0x1ce   : > { %v4586_v22 = vpop.permute.xlu1 %3418  ;;  %v4588_v27 = vpop.permute.xlu0 %3403  ;;  %v901_v13 = vld [vmem:[#allocation2 + $0x168] sm:$0xff] }
 0x1cf   : > { %5533 = vst [vmem:[#allocation16_spill] sm:$0xff] %v4588_v27 }
 0x1d0   : > { %3698 = vrot.lane.b32.xlu1 %v3687_v46, %s4040_s12  ;;  %3703 = vrot.lane.b32.xlu0 %v3677_v18, %s4043_s9 }
 0x1d2   : > { %v4592_v36 = vpop.permute.xlu1 %3423  ;;  %v4594_v37 = vpop.permute.xlu0 %3408 }
 0x1d3   : > { %5534 = vst [vmem:[#allocation17_spill] sm:$0xff] %v4594_v37  ;;  %v3356_v37 = vunpack.i.h.bf16 %v4528_v32 }
 0x1d4   : > { %3718 = vrot.lane.b32.xlu1 %v3717_v28, %s4043_s9  ;;  %3708 = vrot.lane.b32.xlu0 %v3682_v23, %s4045_s11 }
 0x1d5   : > { %v2031_v8 = vsel %vm2027_vm5, %v1998_v47, %v3356_v37  ;;  %v1999_v47 = vsel %vm603_vm2, %v4330_v39, %v3300_v20  ;;  %v3390_v37 = vunpack.i.l.bf16 %v4551_v19  ;;  %v3276_v39 = vunpack.i.h.bf16 %v4482_v60 }
 0x1d6   : > { %v3444_v41 = vpop.permute.xlu1 %3443  ;;  %v4598_v43 = vpop.permute.xlu0 %3428  ;;  %v3281_v20 = vunpack.i.h.bf16 %v4488_v3 }
 0x1d7   : > { %v3446_v0 = vunpack.i.h.bf16 %v3444_v41  ;;  %v3445_v59 = vunpack.i.l.bf16 %v3444_v41 }
 0x1d8   : > { %3723 = vrot.lane.b32.xlu1 %v3722_v45, %s4045_s11  ;;  %3713 = vrot.lane.b32.xlu0 %v3687_v46, %s4047_s20 }
 0x1d9   : > { %v2003_v27 = vsel %vm603_vm2, %v4405_v51, %v3445_v59  ;;  %v902_v51 = vld [vmem:[#allocation2 + $0x170] sm:$0xff] }
 0x1da   : > { %v4602_v18 = vpop.permute.xlu1 %3453  ;;  %v4604_v50 = vpop.permute.xlu0 %3433  ;;  %v934_v59 = vld [vmem:[#allocation2 + $0x171] sm:$0xff]  ;;  %v4667_v6 = vpack.i.bf16 %v902_v51, %v901_v13  ;;  %v2000_v13 = vsel %vm603_vm2, %v4332_v40, %v3301_v42  ;;  %v3275_v40 = vunpack.i.l.bf16 %v4482_v60  ;;  %v3280_v42 = vunpack.i.l.bf16 %v4488_v3 }
 0x1db   : > { %v2013_v60 = vsel %vm603_vm2, %v4378_v29, %v3390_v37  ;;  %v3396_v3 = vunpack.i.h.bf16 %v4567_v57  ;;  %v3315_v29 = vunpack.i.l.bf16 %v4506_v16 }
 0x1dc   : > { %3728 = vrot.lane.b32.xlu1 %v4606_v54, %s4047_s20  ;;  %3733 = vrot.lane.b32.xlu0 %v3717_v28, %s4042_s21  ;;  %v950_v28 = vld [vmem:[#allocation2 + $0xb2] sm:$0xff] }
 0x1dd   : > { %v4651_v1 = vpack.i.bf16 %v950_v28, %v949_v14  ;;  %v3270_v28 = vunpack.i.l.bf16 %v4476_v55 }
 0x1de   : > { %v4611_v23 = vpop.permute.xlu1 %3458  ;;  %v4613_v53 = vpop.permute.xlu0 %3438 }
 0x1e0   : > { %3748 = vrot.lane.b32.xlu1 %v3722_v45, %s4041_s23  ;;  %3738 = vrot.lane.b32.xlu0 %v3722_v45, %s4044_s8  ;;  %v2004_v45 = vsel %vm603_vm2, %v4407_v52, %v3446_v0  ;;  %v933_v0 = vld [vmem:[#allocation2 + $0x169] sm:$0xff] }
 0x1e1   : > { %v4669_v14 = vpack.i.bf16 %v934_v59, %v933_v0 }
 0x1e2   : > { %v4619_v2 = vpop.permute.xlu1 %3463  ;;  %v3449_v46 = vpop.permute.xlu0 %3448 }
 0x1e3   : > { %v3451_v38 = vunpack.i.h.bf16 %v3449_v46  ;;  %v3450_v41 = vunpack.i.l.bf16 %v3449_v46  ;;  %v1997_v46 = vsel %vm603_vm2, %v4387_v34, %v3350_v4 }
 0x1e4   : > { %3758 = vrot.lane.b32.xlu1 %v4621_v44, %s4042_s21  ;;  %3743 = vrot.lane.b32.xlu0 %v4606_v54, %s4046_s18  ;;  %v2030_v10 = vsel %vm2027_vm5, %v1997_v46, %v3355_v33 }
 0x1e5   : > { %v4636_v32 = vsel %vm2027_vm5, %v2004_v45, %v3451_v38  ;;  %v4639_v52 = vsel %vm2027_vm5, %v2003_v27, %v3450_v41  ;;  %v4653_v27 = vpack.i.bf16 %v809_v48, %v808_v26  ;;  %v4655_v38 = vpack.i.bf16 %v841_v58, %v840_v49  ;;  %v965_v45 = vld [vmem:[#allocation2 + $0x16a] sm:$0xff] }
 0x1e6   : > { %5535 = vst [vmem:[#allocation18_spill] sm:$0xff] %v4636_v32  ;;  %v4645_v34 = vpop.permute.xlu1 %3483  ;;  %v4647_v4 = vpop.permute.xlu0 %3468  ;;  %v4657_v41 = vpack.i.bf16 %v873_v61, %v872_v35  ;;  %v4663_v32 = vld [vmem:[#allocation2 + $0x198] sm:$0xff]  ;;  %v3271_v58 = vunpack.i.h.bf16 %v4476_v55  ;;  %v3306_v26 = vunpack.i.h.bf16 %v4492_v7  ;;  %v3305_v48 = vunpack.i.l.bf16 %v4492_v7 }
 0x1e7   : > { %v4684_v35 = vpack.i.bf16 %v966_v15, %v965_v45  ;;  %v2063_v55 = vsel %vm2060_vm6, %v2030_v10, %v3270_v28  ;;  %v3395_v61 = vunpack.i.l.bf16 %v4567_v57  ;;  %v3311_v10 = vunpack.i.h.bf16 %v4500_v11 }
 0x1e8   : > { %3763 = vrot.lane.b32.xlu1 %v4649_v31, %s4044_s8  ;;  %3753 = vrot.lane.b32.xlu0 %v4606_v54, %s4040_s12  ;;  %v2064_v7 = vsel %vm2060_vm6, %v2031_v8, %v3271_v58  ;;  %v3832_v54 = vpack.i.bf16 %v4665_v5, %v4663_v32  ;;  %v3391_v15 = vunpack.i.h.bf16 %v4551_v19  ;;  %v4702_v46 = vsel %vm2027_vm5, %v1999_v47, %v3305_v48 }
 0x1e9   : > { %v4705_v51 = vsel %vm2027_vm5, %v2000_v13, %v3306_v26  ;;  %v2095_v0 = vsel %vm361_vm0, %v2063_v55, %v3275_v40  ;;  %v2096_v59 = vsel %vm361_vm0, %v2064_v7, %v3276_v39  ;;  %v3310_v8 = vunpack.i.l.bf16 %v4500_v11 }
 0x1ea   : > { %v3494_v49 = vpop.permute.xlu1 %3493  ;;  %v4682_v33 = vpop.permute.xlu0 %3473  ;;  %v2046_v58 = vsel %vm2027_vm5, %v2013_v60, %v3395_v61  ;;  %v3486_v28 = vunpack.i.h.bf16 %v4645_v34  ;;  %v3485_v26 = vunpack.i.l.bf16 %v4645_v34  ;;  %v3316_v48 = vunpack.i.h.bf16 %v4506_v16 }
 0x1eb   : > { %v3321_v57 = vunpack.i.h.bf16 %v4515_v56  ;;  %v3320_v47 = vunpack.i.l.bf16 %v4515_v56  ;;  %v3341_v13 = vunpack.i.h.bf16 %v4524_v25  ;;  %v2014_v11 = vsel %vm603_vm2, %v4380_v30, %v3391_v15 }
 0x1ec   : > { %3773 = vrot.lane.b32.xlu1 %v4649_v31, %s4041_s23  ;;  %3768 = vrot.lane.b32.xlu0 %v4651_v1, %s4046_s18  ;;  %v2128_v37 = vsel %vm2125_vm7, %v2095_v0, %v3280_v42  ;;  %v2129_v34 = vsel %vm2125_vm7, %v2096_v59, %v3281_v20  ;;  %v2047_v16 = vsel %vm2027_vm5, %v2014_v11, %v3396_v3  ;;  %v3496_v7 = vunpack.i.h.bf16 %v3494_v49  ;;  %v689_v11 = vld [vmem:[#allocation2 + $0x50] sm:$0xff] }
 0x1ed   : > { %v2079_v55 = vsel %vm2060_vm6, %v2046_v58, %v3310_v8  ;;  %v3495_v61 = vunpack.i.l.bf16 %v3494_v49  ;;  %v2020_v60 = vsel %vm603_vm2, %v4421_v63, %v3486_v28  ;;  %v2019_v30 = vsel %vm603_vm2, %v4419_v62, %v3485_v26  ;;  %v688_v26 = vld [vmem:[#allocation2 + $0x48] sm:$0xff] }
 0x1ee   : > { %v3499_v45 = vpop.permute.xlu1 %3498  ;;  %v4712_v19 = vpop.permute.xlu0 %3478  ;;  %v2080_v3 = vsel %vm2060_vm6, %v2047_v16, %v3311_v10  ;;  %v3416_v49 = vunpack.i.h.bf16 %v4579_v9  ;;  %v3415_v62 = vunpack.i.l.bf16 %v4579_v9 }
 0x1ef   : > { %v3501_v20 = vunpack.i.h.bf16 %v3499_v45  ;;  %v3500_v0 = vunpack.i.l.bf16 %v3499_v45  ;;  %v3421_v45 = vunpack.i.h.bf16 %v4586_v22  ;;  %v2161_v58 = vsel %vm2158_vm8, %v2128_v37, %v3495_v61 }
 0x1f0   : > { %3778 = vrot.lane.b32.xlu1 %v4651_v1, %s4040_s12  ;;  %3783 = vrot.lane.b32.xlu0 %v4621_v44, %s4043_s9 }
 0x1f2   : > { %v3509_v39 = vpop.permute.xlu1 %3508  ;;  %v3489_v40 = vpop.permute.xlu0 %3488 }
 0x1f3   : > { %v3491_v42 = vunpack.i.h.bf16 %v3489_v40  ;;  %v3490_v15 = vunpack.i.l.bf16 %v3489_v40  ;;  %v3511_v59 = vunpack.i.h.bf16 %v3509_v39  ;;  %v3510_v44 = vunpack.i.l.bf16 %v3509_v39 }
 0x1f4   : > { %3803 = vrot.lane.b32.xlu1 %v4508_v17, %s4041_s23  ;;  %3788 = vrot.lane.b32.xlu0 %v4649_v31, %s4045_s11  ;;  %v2162_v17 = vsel %vm2158_vm8, %v2129_v34, %v3496_v7 }
 0x1f5   : > { %v4742_v8 = vsel %vm2027_vm5, %v2020_v60, %v3491_v42  ;;  %v4745_v63 = vsel %vm2027_vm5, %v2019_v30, %v3490_v15  ;;  %v2194_v30 = vsel %vm2191_vm9, %v2161_v58, %v3500_v0  ;;  %v2195_v31 = vsel %vm2191_vm9, %v2162_v17, %v3501_v20 }
 0x1f6   : > { %v3514_v10 = vpop.permute.xlu1 %3513  ;;  %v3504_v28 = vpop.permute.xlu0 %3503  ;;  %v2002_v9 = vsel %vm603_vm2, %v689_v11, %v3511_v59  ;;  %v2001_v42 = vsel %vm603_vm2, %v688_v26, %v3510_v44  ;;  %v3420_v15 = vunpack.i.l.bf16 %v4586_v22  ;;  %v3426_v17 = vunpack.i.h.bf16 %v4592_v36 }
 0x1f7   : > { %v3516_v16 = vunpack.i.h.bf16 %v3514_v10  ;;  %v3515_v39 = vunpack.i.l.bf16 %v3514_v10  ;;  %v3506_v40 = vunpack.i.h.bf16 %v3504_v28  ;;  %v3505_v60 = vunpack.i.l.bf16 %v3504_v28 }
 0x1f8   : > { %3813 = vrot.lane.b32.xlu1 %v4653_v27, %s4043_s9  ;;  %3793 = vrot.lane.b32.xlu0 %v4651_v1, %s4047_s20  ;;  %v3425_v10 = vunpack.i.l.bf16 %v4592_v36  ;;  %v2111_v28 = vsel %vm361_vm0, %v2079_v55, %v3315_v29  ;;  %v2112_v26 = vsel %vm361_vm0, %v2080_v3, %v3316_v48  ;;  %v4783_v36 = vsel %vm603_vm2, %v4364_v12, %v3341_v13 }
 0x1f9   : > { %v2034_v37 = vsel %vm2027_vm5, %v2001_v42, %v3515_v39  ;;  %v2035_v34 = vsel %vm2027_vm5, %v2002_v9, %v3516_v16  ;;  %v2227_v7 = vsel %vm2224_vm10, %v2194_v30, %v3505_v60  ;;  %v2228_v61 = vsel %vm2224_vm10, %v2195_v31, %v3506_v40 }
 0x1fa   : > { %v2067_v20 = vsel %vm2060_vm6, %v2034_v37, %v3415_v62  ;;  %v2068_v0 = vsel %vm2060_vm6, %v2035_v34, %v3416_v49  ;;  %v2258_v59 = vpack.c.bf16 %v2228_v61, %v2227_v7  ;;  %v3534_v44 = vpop.permute.xlu1 %3533  ;;  %v3519_v58 = vpop.permute.xlu0 %3518  ;;  %v3346_v49 = vunpack.i.h.bf16 %v4522_v24 }
 0x1fb   : > { %v3536_v11 = vunpack.i.h.bf16 %v3534_v44  ;;  %v3535_v16 = vunpack.i.l.bf16 %v3534_v44  ;;  %v2099_v22 = vsel %vm361_vm0, %v2067_v20, %v3420_v15  ;;  %v2100_v1 = vsel %vm361_vm0, %v2068_v0, %v3421_v45 }
 0x1fc   : > { %3818 = vrot.lane.b32.xlu1 %v4655_v38, %s4045_s11  ;;  %3130 = vmatmul.mubr.msk.bf16.vlgmr.msra.gmra.mrb[16].mxu1 %vm2300_vm11, %v2258_v59  ;;  %v3345_v62 = vunpack.i.l.bf16 %v4522_v24  ;;  %v3340_v48 = vunpack.i.l.bf16 %v4524_v25  ;;  %v2144_v29 = vsel %vm2125_vm7, %v2111_v28, %v3320_v47  ;;  %v2145_v55 = vsel %vm2125_vm7, %v2112_v26, %v3321_v57  ;;  %v937_v24 = vld [vmem:[#allocation2 + $0x199] sm:$0xff] }
 0x1fd   : > { %3798 = vrot.lane.b32.xlu0 %v4517_v21, %s4046_s18  ;;  %v4795_v39 = vsel %vm2125_vm7, %v2099_v22, %v3425_v10  ;;  %v4798_v12 = vsel %vm2125_vm7, %v2100_v1, %v3426_v17  ;;  %v3521_v13 = vunpack.i.h.bf16 %v3519_v58  ;;  %v3520_v40 = vunpack.i.l.bf16 %v3519_v58  ;;  %v704_v1 = vld [vmem:[#allocation2 + $0x108] sm:$0xff] }
 0x1fe   : > { %v3539_v3 = vpop.permute.xlu1 %3538  ;;  %v3524_v45 = vpop.permute.xlu0 %3523  ;;  %v2177_v31 = vsel %vm2158_vm8, %v2144_v29, %v3535_v16  ;;  %v2178_v47 = vsel %vm2158_vm8, %v2145_v55, %v3536_v11  ;;  %v3431_v57 = vunpack.i.h.bf16 %v4598_v43  ;;  %v3430_v42 = vunpack.i.l.bf16 %v4598_v43  ;;  %v705_v29 = vld [vmem:[#allocation2 + $0x110] sm:$0xff] }
 0x1ff   : > { %v3541_v60 = vunpack.i.h.bf16 %v3539_v3  ;;  %v3540_v30 = vunpack.i.l.bf16 %v3539_v3  ;;  %v3526_v9 = vunpack.i.h.bf16 %v3524_v45  ;;  %v3525_v56 = vunpack.i.l.bf16 %v3524_v45 }
 0x200   : > { %3823 = vrot.lane.b32.xlu1 %v4657_v41, %s4047_s20  ;;  %v3456_v7 = vunpack.i.h.bf16 %v4602_v18  ;;  %v3455_v61 = vunpack.i.l.bf16 %v4602_v18  ;;  %v3436_v15 = vunpack.i.h.bf16 %v4604_v50  ;;  %v3435_v20 = vunpack.i.l.bf16 %v4604_v50 }
 0x201   : > { %v2210_v37 = vsel %vm2191_vm9, %v2177_v31, %v3540_v30  ;;  %v2211_v34 = vsel %vm2191_vm9, %v2178_v47, %v3541_v60  ;;  %3808 = vrot.lane.b32.xlu0 %v4517_v21, %s4040_s12  ;;  %v2066_v43 = vsel %vm2060_vm6, %v4705_v51, %v3521_v13  ;;  %v2065_v44 = vsel %vm2060_vm6, %v4702_v46, %v3520_v40 }
 0x202   : > { %v3549_v0 = vpop.permute.xlu1 %3548  ;;  %v3529_v59 = vpop.permute.xlu0 %3528  ;;  %v2097_v21 = vsel %vm361_vm0, %v2065_v44, %v3525_v56  ;;  %v2098_v10 = vsel %vm361_vm0, %v2066_v43, %v3526_v9  ;;  %v3461_v50 = vunpack.i.h.bf16 %v4611_v23  ;;  %v3460_v51 = vunpack.i.l.bf16 %v4611_v23 }
 0x203   : > { %v3531_v58 = vunpack.i.h.bf16 %v3529_v59  ;;  %v3530_v17 = vunpack.i.l.bf16 %v3529_v59  ;;  %v3551_v28 = vunpack.i.h.bf16 %v3549_v0  ;;  %v3550_v18 = vunpack.i.l.bf16 %v3549_v0 }
 0x204   : > { %3833 = vrot.lane.b32.xlu1 %v3832_v54, %s4042_s21  ;;  %v3441_v11 = vunpack.i.h.bf16 %v4613_v53  ;;  %v3440_v16 = vunpack.i.l.bf16 %v4613_v53  ;;  %v3466_v0 = vunpack.i.h.bf16 %v4619_v2 }
 0x205   : > { %v2130_v26 = vsel %vm2125_vm7, %v2097_v21, %v3530_v17  ;;  %v2131_v46 = vsel %vm2125_vm7, %v2098_v10, %v3531_v58  ;;  %3828 = vrot.lane.b32.xlu0 %v4653_v27, %s4042_s21  ;;  %v2018_v13 = vsel %vm603_vm2, %v705_v29, %v3551_v28  ;;  %v2017_v27 = vsel %vm603_vm2, %v704_v1, %v3550_v18  ;;  %v970_v29 = vld [vmem:[#allocation2 + $0x1a2] sm:$0xff] }
 0x206   : > { %v2163_v22 = vsel %vm2158_vm8, %v2130_v26, %v3430_v42  ;;  %v2164_v32 = vsel %vm2158_vm8, %v2131_v46, %v3431_v57  ;;  %v3554_v5 = vpop.permute.xlu1 %3553  ;;  %v3544_v54 = vpop.permute.xlu0 %3543  ;;  %v2049_v10 = vsel %vm2027_vm5, %v4783_v36, %v3346_v49  ;;  %v938_v49 = vld [vmem:[#allocation2 + $0x1a1] sm:$0xff] }
 0x207   : > { %v3556_v23 = vunpack.i.h.bf16 %v3554_v5  ;;  %v3555_v55 = vunpack.i.l.bf16 %v3554_v5  ;;  %v3546_v3 = vunpack.i.h.bf16 %v3544_v54  ;;  %v3545_v45 = vunpack.i.l.bf16 %v3544_v54 }
 0x208   : > { %3843 = vrot.lane.b32.xlu1 %v4667_v6, %s4042_s21  ;;  %v2196_v53 = vsel %vm2191_vm9, %v2163_v22, %v3435_v20  ;;  %v2197_v40 = vsel %vm2191_vm9, %v2164_v32, %v3436_v15  ;;  %v3471_v22 = vunpack.i.h.bf16 %v4647_v4  ;;  %v3470_v32 = vunpack.i.l.bf16 %v4647_v4  ;;  %s4048_s21 = smov [#allocation6]  }
 0x209   : > { %v2050_v60 = vsel %vm2027_vm5, %v2017_v27, %v3555_v55  ;;  %v2051_v30 = vsel %vm2027_vm5, %v2018_v13, %v3556_v23  ;;  %v4843_v31 = vsel %vm2224_vm10, %v2211_v34, %v3546_v3  ;;  %v4846_v47 = vsel %vm2224_vm10, %v2210_v37, %v3545_v45  ;;  %3838 = vrot.lane.b32.xlu0 %v4655_v38, %s4044_s8  ;;  %v3901_v34 = vld [vmem:[#allocation2 + $0xf0] sm:$0xff] }
 0x20a   : > { %v2083_v9 = vsel %vm2060_vm6, %v2050_v60, %v3455_v61  ;;  %v2084_v56 = vsel %vm2060_vm6, %v2051_v30, %v3456_v7  ;;  %v2266_v57 = vpack.c.bf16 %v4843_v31, %v4846_v47  ;;  %v4854_v42 = vpop.permute.xlu1 %3573  ;;  %v3559_v15 = vpop.permute.xlu0 %3558  ;;  %v2229_v20 = vsel %vm2224_vm10, %v2196_v53, %v3440_v16 }
 0x20b   : > { %v2015_v37 = vsel %vm603_vm2, %v3901_v34, %v3340_v48  ;;  %v3465_v38 = vunpack.i.l.bf16 %v4619_v2  ;;  %v3561_v61 = vunpack.i.h.bf16 %v3559_v15  ;;  %v3560_v59 = vunpack.i.l.bf16 %v3559_v15 }
 0x20c   : > { %v2230_v7 = vsel %vm2224_vm10, %v2197_v40, %v3441_v11  ;;  %3848 = vrot.lane.b32.xlu1 %v4669_v14, %s4044_s8  ;;  %v2115_v43 = vsel %vm361_vm0, %v2083_v9, %v3460_v51  ;;  %v2116_v44 = vsel %vm361_vm0, %v2084_v56, %v3461_v50  ;;  %v2048_v21 = vsel %vm2027_vm5, %v2015_v37, %v3345_v62 }
 0x20d   : > { %v2259_v58 = vpack.c.bf16 %v2230_v7, %v2229_v20  ;;  %3853 = vrot.lane.b32.xlu0 %v4684_v35, %s4046_s18  ;;  %v4870_v25 = vsel %vm2125_vm7, %v2115_v43, %v3465_v38  ;;  %v4875_v17 = vsel %vm2125_vm7, %v2116_v44, %v3466_v0  ;;  %v2082_v50 = vsel %vm2060_vm6, %v2049_v10, %v3561_v61  ;;  %v694_v38 = vld [vmem:[#allocation2 + $0x90] sm:$0xff]  ;;  %v695_v61 = vld [vmem:[#allocation2 + $0x98] sm:$0xff] }
 0x20e   : > { %v4872_v48 = vpop.permute.xlu1 %3578  ;;  %v3564_v2 = vpop.permute.xlu0 %3563  ;;  %v2081_v51 = vsel %vm2060_vm6, %v2048_v21, %v3560_v59  ;;  %v3867_v5 = vpack.i.bf16 %v938_v49, %v937_v24  ;;  %v3476_v23 = vunpack.i.h.bf16 %v4682_v33  ;;  %v3475_v55 = vunpack.i.l.bf16 %v4682_v33 }
 0x20f   : > { %3133 = vmatprep.mubr.msk.bf16.mxu1 %vm2300_vm11, %v2259_v58  ;;  %v3566_v28 = vunpack.i.h.bf16 %v3564_v2  ;;  %v3565_v18 = vunpack.i.l.bf16 %v3564_v2  ;;  %v3481_v27 = vunpack.i.h.bf16 %v4712_v19  ;;  %v3480_v53 = vunpack.i.l.bf16 %v4712_v19 }
 0x210   : > { %3858 = vrot.lane.b32.xlu1 %v4669_v14, %s4041_s23  ;;  %s5449_s23 = scalar_lea.hbm %s5509_s7, %s3035_s19 }
 0x211   : > { %v2113_v26 = vsel %vm361_vm0, %v2081_v51, %v3565_v18  ;;  %v2114_v62 = vsel %vm361_vm0, %v2082_v50, %v3566_v28  ;;  %3873 = vrot.lane.b32.xlu0 %v4667_v6, %s4043_s9  ;;  %v969_v6 = vld [vmem:[#allocation2 + $0x19a] sm:$0xff]  ;;  %s3972_s9 = sshll.u32 %s4048_s21, 4  ;;  %s3973_s9 = int_to_ptr.vmem [resolvable:$false] %s3972_s9 }
 0x212   : > { %v4893_v36 = vpop.permute.xlu1 %3583  ;;  %v3569_v46 = vpop.permute.xlu0 %3568 }
 0x213   : > { %v3571_v11 = vunpack.i.h.bf16 %v3569_v46  ;;  %v3570_v16 = vunpack.i.l.bf16 %v3569_v46 }
 0x214   : > { %3863 = vrot.lane.b32.xlu1 %v4684_v35, %s4040_s12 }
 0x215   : > { %v2146_v54 = vsel %vm2125_vm7, %v2113_v26, %v3570_v16  ;;  %v2147_v1 = vsel %vm2125_vm7, %v2114_v62, %v3571_v11  ;;  %3878 = vrot.lane.b32.xlu0 %v4669_v14, %s4045_s11  ;;  %v3892_v14 = vpack.i.bf16 %v970_v29, %v969_v6 }
 0x216   : > { %v2179_v3 = vsel %vm2158_vm8, %v2146_v54, %v3470_v32  ;;  %v2180_v4 = vsel %vm2158_vm8, %v2147_v1, %v3471_v22  ;;  %v3604_v45 = vpop.permute.xlu1 %3603  ;;  %v4907_v13 = vpop.permute.xlu0 %3588 }
 0x217   : > { %v2212_v40 = vsel %vm2191_vm9, %v2179_v3, %v3475_v55  ;;  %v2213_v60 = vsel %vm2191_vm9, %v2180_v4, %v3476_v23  ;;  %v3606_v20 = vunpack.i.h.bf16 %v3604_v45  ;;  %v3605_v34 = vunpack.i.l.bf16 %v3604_v45  ;;  %v692_v3 = vld [vmem:[#allocation2 + $0x78] sm:$0xff] }
 0x218   : > { %3868 = vrot.lane.b32.xlu1 %v3867_v5, %s4044_s8  ;;  %v4917_v33 = vsel %vm2224_vm10, %v2212_v40, %v3480_v53  ;;  %v4920_v30 = vsel %vm2224_vm10, %v2213_v60, %v3481_v27  ;;  %v3575_v27 = vunpack.i.l.bf16 %v4854_v42  ;;  %v3581_v40 = vunpack.i.h.bf16 %v4872_v48  ;;  %s3974_s8 = scalar_lea.vmem %s3973_s9, 8192 }
 0x219   : > { %3883 = vrot.lane.b32.xlu0 %v4684_v35, %s4047_s20  ;;  %v2267_v19 = vpack.c.bf16 %v4920_v30, %v4917_v33  ;;  %v2008_v43 = vsel %vm603_vm2, %v695_v61, %v3606_v20  ;;  %v2007_v44 = vsel %vm603_vm2, %v694_v38, %v3605_v34  ;;  %v3580_v60 = vunpack.i.l.bf16 %v4872_v48 }
 0x21a   : > { %v4922_v9 = vpop.permute.xlu1 %3613  ;;  %v4924_v56 = vpop.permute.xlu0 %3593 }
 0x21c   : > { %3893 = vrot.lane.b32.xlu1 %v3892_v14, %s4046_s18 }
 0x21d   : > { %3888 = vrot.lane.b32.xlu0 %v4657_v41, %s4046_s18  ;;  %s5546_s18 = sshll.u32 %s4194_s16, 8 }
 0x21e   : > { %v4931_v15 = vpop.permute.xlu1 %3618  ;;  %v4933_v35 = vpop.permute.xlu0 %3598  ;;  %s5328_s20 = scalar_lea.vmem [#allocation6], %s5546_s18 }
 0x21f   : > { %s2892_s22 = sshll.u32 %s5328_s20, 4  ;;  %s5453_s22 = int_to_ptr.vmem [resolvable:$true] %s2892_s22 }
 0x220   : > { %p3975_p8 = scmp.lt.s32.totalorder %s5453_s22, %s3973_s9 }
 0x222   : > { %v4935_v37 = vpop.permute.xlu1 %3623  ;;  %v3609_v0 = vpop.permute.xlu0 %3608 }
 0x223   : > { %v3611_v59 = vunpack.i.h.bf16 %v3609_v0  ;;  %v3610_v7 = vunpack.i.l.bf16 %v3609_v0 }
 0x225   : > { %v4940_v58 = vsel %vm2027_vm5, %v2008_v43, %v3611_v59  ;;  %v4943_v41 = vsel %vm2027_vm5, %v2007_v44, %v3610_v7  ;;  %v3586_v43 = vunpack.i.h.bf16 %v4893_v36  ;;  %v3585_v44 = vunpack.i.l.bf16 %v4893_v36 }
 0x226   : > { %v3639_v2 = vpop.permute.xlu1 %3638  ;;  %v4945_v21 = vpop.permute.xlu0 %3628 }
 0x227   : > { %v3641_v18 = vunpack.i.h.bf16 %v3639_v2  ;;  %v3640_v50 = vunpack.i.l.bf16 %v3639_v2 }
 0x229   : > { %v2165_v49 = vsel %vm2158_vm8, %v4795_v39, %v3640_v50  ;;  %v2166_v46 = vsel %vm2158_vm8, %v4798_v12, %v3641_v18  ;;  %v693_v39 = vld [vmem:[#allocation2 + $0x80] sm:$0xff]  ;;  %v3576_v12 = vunpack.i.h.bf16 %v4854_v42 }
 0x22a   : > { %v3644_v10 = vpop.permute.xlu1 %3643  ;;  %v4947_v28 = vpop.permute.xlu0 %3633 }
 0x22b   : > { %v3646_v51 = vunpack.i.h.bf16 %v3644_v10  ;;  %v3645_v26 = vunpack.i.l.bf16 %v3644_v10 }
 0x22d   : > { %v2198_v22 = vsel %vm2191_vm9, %v2165_v49, %v3645_v26  ;;  %v2199_v32 = vsel %vm2191_vm9, %v2166_v46, %v3646_v51  ;;  %v3591_v26 = vunpack.i.h.bf16 %v4907_v13  ;;  %v5536_v46 = vld [vmem:[#allocation18_spill] sm:$0xff] }
 0x22e   : > { %v3654_v62 = vpop.permute.xlu1 %3653  ;;  %v3649_v24 = vpop.permute.xlu0 %3648 }
 0x22f   : > { %v3651_v11 = vunpack.i.h.bf16 %v3649_v24  ;;  %v3650_v16 = vunpack.i.l.bf16 %v3649_v24  ;;  %v3656_v5 = vunpack.i.h.bf16 %v3654_v62  ;;  %v3655_v54 = vunpack.i.l.bf16 %v3654_v62 }
 0x230   : > { %v3590_v62 = vunpack.i.l.bf16 %v4907_v13 }
 0x231   : > { %v2232_v1 = vsel %vm2224_vm10, %v2199_v32, %v3651_v11  ;;  %v2231_v6 = vsel %vm2224_vm10, %v2198_v22, %v3650_v16  ;;  %v2006_v53 = vsel %vm603_vm2, %v693_v39, %v3656_v5  ;;  %v2005_v14 = vsel %vm603_vm2, %v692_v3, %v3655_v54 }
 0x232   : > { %v2260_v29 = vpack.c.bf16 %v2232_v1, %v2231_v6  ;;  %v3659_v23 = vpop.permute.xlu1 %3658  ;;  %v3664_v55 = vpop.permute.xlu0 %3663  ;;  %v3595_v6 = vunpack.i.l.bf16 %v4924_v56 }
 0x233   : > { %v3661_v4 = vunpack.i.h.bf16 %v3659_v23  ;;  %v3660_v45 = vunpack.i.l.bf16 %v3659_v23  ;;  %v3666_v61 = vunpack.i.h.bf16 %v3664_v55  ;;  %v3665_v42 = vunpack.i.l.bf16 %v3664_v55 }
 0x234   : > { %3134 = vmatmul.mubr.msk.bf16.gmra.mrb[20].mxu1 %vm2300_vm11, %v2260_v29 }
 0x235   : > { %v2038_v20 = vsel %vm2027_vm5, %v2005_v14, %v3660_v45  ;;  %v2039_v34 = vsel %vm2027_vm5, %v2006_v53, %v3661_v4  ;;  %v2069_v36 = vsel %vm2060_vm6, %v4639_v52, %v3665_v42  ;;  %v2070_v11 = vsel %vm2060_vm6, %v5536_v46, %v3666_v61 }
 0x236   : > { %v2071_v0 = vsel %vm2060_vm6, %v2038_v20, %v3575_v27  ;;  %v2072_v38 = vsel %vm2060_vm6, %v2039_v34, %v3576_v12  ;;  %v3679_v59 = vpop.permute.xlu1 %3678  ;;  %v3669_v7 = vpop.permute.xlu0 %3668  ;;  %v3601_v4 = vunpack.i.h.bf16 %v4933_v35  ;;  %v3600_v45 = vunpack.i.l.bf16 %v4933_v35 }
 0x237   : > { %v3681_v2 = vunpack.i.h.bf16 %v3679_v59  ;;  %v3680_v10 = vunpack.i.l.bf16 %v3679_v59  ;;  %v3671_v18 = vunpack.i.h.bf16 %v3669_v7  ;;  %v3670_v48 = vunpack.i.l.bf16 %v3669_v7 }
 0x238   : > { %v2103_v50 = vsel %vm361_vm0, %v2071_v0, %v3580_v60  ;;  %v2104_v51 = vsel %vm361_vm0, %v2072_v38, %v3581_v40 }
 0x239   : > { %v2181_v24 = vsel %vm2158_vm8, %v4870_v25, %v3680_v10  ;;  %v2182_v49 = vsel %vm2158_vm8, %v4875_v17, %v3681_v2  ;;  %v4983_v32 = vsel %vm2125_vm7, %v2103_v50, %v3585_v44  ;;  %v4986_v5 = vsel %vm2125_vm7, %v2104_v51, %v3586_v43  ;;  %v708_v43 = vld [vmem:[#allocation2 + $0x138] sm:$0xff]  ;;  %v709_v44 = vld [vmem:[#allocation2 + $0x140] sm:$0xff] }
 0x23a   : > { %v3684_v16 = vpop.permute.xlu1 %3683  ;;  %v3674_v22 = vpop.permute.xlu0 %3673  ;;  %v3596_v17 = vunpack.i.h.bf16 %v4924_v56  ;;  %v2101_v52 = vsel %vm361_vm0, %v2069_v36, %v3670_v48  ;;  %v2102_v29 = vsel %vm361_vm0, %v2070_v11, %v3671_v18  ;;  %v3616_v50 = vunpack.i.h.bf16 %v4922_v9 }
 0x23b   : > { %v3686_v13 = vunpack.i.h.bf16 %v3684_v16  ;;  %v3685_v54 = vunpack.i.l.bf16 %v3684_v16  ;;  %v3676_v25 = vunpack.i.h.bf16 %v3674_v22  ;;  %v3675_v1 = vunpack.i.l.bf16 %v3674_v22 }
 0x23c   : > { %v3615_v51 = vunpack.i.l.bf16 %v4922_v9  ;;  %v3626_v11 = vunpack.i.h.bf16 %v4935_v37  ;;  %v3625_v16 = vunpack.i.l.bf16 %v4935_v37 }
 0x23d   : > { %v2214_v23 = vsel %vm2191_vm9, %v2181_v24, %v3685_v54  ;;  %v2215_v55 = vsel %vm2191_vm9, %v2182_v49, %v3686_v13  ;;  %v2134_v3 = vsel %vm2125_vm7, %v2101_v52, %v3675_v1  ;;  %v2135_v39 = vsel %vm2125_vm7, %v2102_v29, %v3676_v25 }
 0x23e   : > { %v2167_v12 = vsel %vm2158_vm8, %v2134_v3, %v3590_v62  ;;  %v2168_v56 = vsel %vm2158_vm8, %v2135_v39, %v3591_v26  ;;  %v3694_v27 = vpop.permute.xlu1 %3693  ;;  %v3689_v40 = vpop.permute.xlu0 %3688  ;;  %v3621_v24 = vunpack.i.h.bf16 %v4931_v15  ;;  %v3620_v49 = vunpack.i.l.bf16 %v4931_v15 }
 0x23f   : > { %v3696_v53 = vunpack.i.h.bf16 %v3694_v27  ;;  %v3695_v14 = vunpack.i.l.bf16 %v3694_v27  ;;  %v2200_v60 = vsel %vm2191_vm9, %v2167_v12, %v3595_v6  ;;  %v2201_v20 = vsel %vm2191_vm9, %v2168_v56, %v3596_v17 }
 0x240   : > { %v3691_v34 = vunpack.i.h.bf16 %v3689_v40  ;;  %v3690_v0 = vunpack.i.l.bf16 %v3689_v40  ;;  %v2233_v38 = vsel %vm2224_vm10, %v2200_v60, %v3600_v45  ;;  %v2234_v61 = vsel %vm2224_vm10, %v2201_v20, %v3601_v4 }
 0x241   : > { %v2261_v42 = vpack.c.bf16 %v2234_v61, %v2233_v38  ;;  %v2022_v26 = vsel %vm603_vm2, %v709_v44, %v3696_v53  ;;  %v2021_v62 = vsel %vm603_vm2, %v708_v43, %v3695_v14  ;;  %v3631_v12 = vunpack.i.h.bf16 %v4945_v21 }
 0x242   : > { %v5005_v35 = vsel %vm2224_vm10, %v2215_v55, %v3691_v34  ;;  %v5008_v59 = vsel %vm2224_vm10, %v2214_v23, %v3690_v0  ;;  %v3699_v7 = vpop.permute.xlu1 %3698  ;;  %v3704_v48 = vpop.permute.xlu0 %3703  ;;  %v3630_v56 = vunpack.i.l.bf16 %v4945_v21  ;;  %v3636_v14 = vunpack.i.h.bf16 %v4947_v28 }
 0x243   : > { %v2268_v2 = vpack.c.bf16 %v5005_v35, %v5008_v59  ;;  %v3701_v10 = vunpack.i.h.bf16 %v3699_v7  ;;  %v3700_v18 = vunpack.i.l.bf16 %v3699_v7  ;;  %3137 = vmatprep.mubr.msk.bf16.mxu1 %vm2300_vm11, %v2261_v42  ;;  %v3706_v15 = vunpack.i.h.bf16 %v3704_v48  ;;  %v5537_v7 = vld [vmem:[#allocation9_spill] sm:$0xff] }
 0x244   : > { %v3705_v17 = vunpack.i.l.bf16 %v3704_v48  ;;  %v3635_v40 = vunpack.i.l.bf16 %v4947_v28  ;;  %v3326_v43 = vunpack.i.h.bf16 %v5537_v7  ;;  %v3325_v44 = vunpack.i.l.bf16 %v5537_v7 }
 0x245   : > { %v2054_v36 = vsel %vm2027_vm5, %v2021_v62, %v3700_v18  ;;  %v2055_v46 = vsel %vm2027_vm5, %v2022_v26, %v3701_v10  ;;  %v2086_v39 = vsel %vm2060_vm6, %v4742_v8, %v3706_v15  ;;  %v5538_v10 = vld [vmem:[#allocation10_spill] sm:$0xff]  ;;  %v5539_v26 = vld [vmem:[#allocation11_spill] sm:$0xff] }
 0x246   : > { %v2087_v22 = vsel %vm2060_vm6, %v2054_v36, %v3615_v51  ;;  %v2088_v9 = vsel %vm2060_vm6, %v2055_v46, %v3616_v50  ;;  %v5025_v13 = vpop.permute.xlu1 %3718  ;;  %v3709_v54 = vpop.permute.xlu0 %3708  ;;  %v2085_v3 = vsel %vm2060_vm6, %v4745_v63, %v3705_v17  ;;  %v3331_v18 = vunpack.i.h.bf16 %v5538_v10  ;;  %v2562_v50 = vld [vmem:[%s5505_s3] sm:$0x3]  ;;  %v5540_v36 = vld [vmem:[#allocation12_spill] sm:$0xff] }
 0x247   : > { %v2119_v25 = vsel %vm361_vm0, %v2087_v22, %v3620_v49  ;;  %v2120_v1 = vsel %vm361_vm0, %v2088_v9, %v3621_v24  ;;  %v3711_v37 = vunpack.i.h.bf16 %v3709_v54  ;;  %v3710_v29 = vunpack.i.l.bf16 %v3709_v54  ;;  %3198 = vmatprep.subr.msk.bf16.mxu0 %vm2349_vm4, %v2562_v50  ;;  %v5541_v9 = vld [vmem:[#allocation13_spill] sm:$0xff] }
 0x248   : > { %v5030_v6 = vsel %vm2125_vm7, %v2119_v25, %v3625_v16  ;;  %v5033_v52 = vsel %vm2125_vm7, %v2120_v1, %v3626_v11  ;;  %v3330_v51 = vunpack.i.l.bf16 %v5538_v10  ;;  %v3336_v62 = vunpack.i.h.bf16 %v5539_v26  ;;  %v5542_v25 = vld [vmem:[#allocation15_spill] sm:$0xff] }
 0x249   : > { %v2117_v27 = vsel %vm361_vm0, %v2085_v3, %v3710_v29  ;;  %v2118_v53 = vsel %vm361_vm0, %v2086_v39, %v3711_v37  ;;  %v3335_v24 = vunpack.i.l.bf16 %v5539_v26  ;;  %v2619_v49 = vsel %vm2349_vm4, %v2562_v50, 0 }
 0x24a   : > { %v5035_v23 = vpop.permute.xlu1 %3723  ;;  %v3714_v55 = vpop.permute.xlu0 %3713  ;;  %v3376_v46 = vunpack.i.h.bf16 %v5540_v36  ;;  %v3375_v11 = vunpack.i.l.bf16 %v5540_v36  ;;  %3162 = vmatpush3.bf16.msra.mxu0 %v2619_v49  ;;  %v3380_v54 = vunpack.i.l.bf16 %v5541_v9  ;;  %v3401_v1 = vunpack.i.h.bf16 %v5542_v25 }
 0x24b   : > { %v3716_v4 = vunpack.i.h.bf16 %v3714_v55  ;;  %v3715_v45 = vunpack.i.l.bf16 %v3714_v55  ;;  %v3400_v29 = vunpack.i.l.bf16 %v5542_v25  ;;  %v5543_v55 = vld [vmem:[#allocation16_spill] sm:$0xff] }
 0x24c   : > { %v3406_v3 = vunpack.i.h.bf16 %v5543_v55  ;;  %v3405_v39 = vunpack.i.l.bf16 %v5543_v55 }
 0x24d   : > { %v2150_v60 = vsel %vm2125_vm7, %v2117_v27, %v3715_v45  ;;  %v2151_v63 = vsel %vm2125_vm7, %v2118_v53, %v3716_v4  ;;  %v5544_v4 = vld [vmem:[#allocation17_spill] sm:$0xff]  ;;  %v3721_v27 = vunpack.i.h.bf16 %v5025_v13  ;;  %v698_v53 = vld [vmem:[#allocation2 + $0xc0] sm:$0xff] }
 0x24e   : > { %v5049_v20 = vpop.permute.xlu1 %3728  ;;  %v2183_v8 = vsel %vm2158_vm8, %v2150_v60, %v3630_v56  ;;  %v2184_v34 = vsel %vm2158_vm8, %v2151_v63, %v3631_v12  ;;  %v5053_v0 = vpop.permute.xlu0 %3733  ;;  %v3411_v45 = vunpack.i.h.bf16 %v5544_v4  ;;  %v3410_v56 = vunpack.i.l.bf16 %v5544_v4 }
 0x24f   : > { %v5056_v21 = vsel %vm2191_vm9, %v2183_v8, %v3635_v40  ;;  %v5059_v38 = vsel %vm2191_vm9, %v2184_v34, %v3636_v14  ;;  %v699_v14 = vld [vmem:[#allocation2 + $0xc8] sm:$0xff]  ;;  %v3736_v26 = vunpack.i.h.bf16 %v5053_v0 }
 0x252   : > { %v3749_v61 = vpop.permute.xlu1 %3748  ;;  %v5061_v28 = vpop.permute.xlu0 %3738 }
 0x253   : > { %v3751_v16 = vunpack.i.h.bf16 %v3749_v61  ;;  %v3750_v22 = vunpack.i.l.bf16 %v3749_v61 }
 0x255   : > { %v2012_v63 = vsel %vm603_vm2, %v699_v14, %v3751_v16  ;;  %v2011_v8 = vsel %vm603_vm2, %v698_v53, %v3750_v22 }
 0x256   : > { %v3759_v42 = vpop.permute.xlu1 %3758  ;;  %v5066_v48 = vpop.permute.xlu0 %3743 }
 0x257   : > { %v3761_v15 = vunpack.i.h.bf16 %v3759_v42  ;;  %v3760_v17 = vunpack.i.l.bf16 %v3759_v42 }
 0x259   : > { %v2169_v42 = vsel %vm2158_vm8, %v4983_v32, %v3760_v17  ;;  %v2170_v7 = vsel %vm2158_vm8, %v4986_v5, %v3761_v15 }
 0x25a   : > { %v3764_v37 = vpop.permute.xlu1 %3763  ;;  %v3754_v12 = vpop.permute.xlu0 %3753 }
 0x25b   : > { %v3756_v40 = vunpack.i.h.bf16 %v3754_v12  ;;  %v3755_v60 = vunpack.i.l.bf16 %v3754_v12  ;;  %v3766_v34 = vunpack.i.h.bf16 %v3764_v37  ;;  %v3765_v61 = vunpack.i.l.bf16 %v3764_v37 }
 0x25d   : > { %v2045_v50 = vsel %vm2027_vm5, %v2012_v63, %v3756_v40  ;;  %v2044_v49 = vsel %vm2027_vm5, %v2011_v8, %v3755_v60  ;;  %v2202_v5 = vsel %vm2191_vm9, %v2169_v42, %v3765_v61  ;;  %v2203_v15 = vsel %vm2191_vm9, %v2170_v7, %v3766_v34 }
 0x25e   : > { %v3774_v25 = vpop.permute.xlu1 %3773  ;;  %v2077_v55 = vsel %vm2060_vm6, %v2044_v49, %v3400_v29  ;;  %v2078_v4 = vsel %vm2060_vm6, %v2045_v50, %v3401_v1  ;;  %v3769_v22 = vpop.permute.xlu0 %3768  ;;  %v3726_v34 = vunpack.i.h.bf16 %v5035_v23  ;;  %v3903_v49 = vld [vmem:[#allocation2 + $0xa8] sm:$0xff] }
 0x25f   : > { %v3776_v16 = vunpack.i.h.bf16 %v3774_v25  ;;  %v3775_v12 = vunpack.i.l.bf16 %v3774_v25  ;;  %v2109_v37 = vsel %vm361_vm0, %v2077_v55, %v3405_v39  ;;  %v2110_v53 = vsel %vm361_vm0, %v2078_v4, %v3406_v3 }
 0x260   : > { %v3771_v32 = vunpack.i.h.bf16 %v3769_v22  ;;  %v3770_v17 = vunpack.i.l.bf16 %v3769_v22  ;;  %v2142_v14 = vsel %vm2125_vm7, %v2109_v37, %v3410_v56  ;;  %v2143_v40 = vsel %vm2125_vm7, %v2110_v53, %v3411_v45  ;;  %v3902_v45 = vld [vmem:[#allocation2 + $0xb0] sm:$0xff] }
 0x261   : > { %v2175_v63 = vsel %vm2158_vm8, %v2142_v14, %v3325_v44  ;;  %v2176_v39 = vsel %vm2158_vm8, %v2143_v40, %v3326_v43  ;;  %v3720_v3 = vunpack.i.l.bf16 %v5025_v13  ;;  %v3725_v56 = vunpack.i.l.bf16 %v5035_v23 }
 0x262   : > { %v2236_v29 = vsel %vm2224_vm10, %v2203_v15, %v3771_v32  ;;  %v2235_v1 = vsel %vm2224_vm10, %v2202_v5, %v3770_v17  ;;  %v3779_v60 = vpop.permute.xlu1 %3778  ;;  %v3784_v42 = vpop.permute.xlu0 %3783  ;;  %v2010_v7 = vsel %vm603_vm2, %v3902_v45, %v3776_v16  ;;  %v2009_v25 = vsel %vm603_vm2, %v3903_v49, %v3775_v12 }
 0x263   : > { %v2262_v8 = vpack.c.bf16 %v2236_v29, %v2235_v1  ;;  %v3781_v50 = vunpack.i.h.bf16 %v3779_v60  ;;  %v3780_v61 = vunpack.i.l.bf16 %v3779_v60  ;;  %v2208_v13 = vsel %vm2191_vm9, %v2175_v63, %v3330_v51  ;;  %v5545_v1 = vld [vmem:[#allocation14_spill] sm:$0xff] }
 0x264   : > { %v2209_v23 = vsel %vm2191_vm9, %v2176_v39, %v3331_v18  ;;  %v3731_v55 = vunpack.i.h.bf16 %v5049_v20  ;;  %v3730_v4 = vunpack.i.l.bf16 %v5049_v20  ;;  %v3786_v32 = vunpack.i.h.bf16 %v3784_v42 }
 0x265   : > { %v2042_v44 = vsel %vm2027_vm5, %v2009_v25, %v3780_v61  ;;  %v2043_v43 = vsel %vm2027_vm5, %v2010_v7, %v3781_v50  ;;  %3138 = vmatmul.mubr.msk.bf16.gmra.mrb[24].mxu1 %vm2300_vm11, %v2262_v8  ;;  %v3785_v51 = vunpack.i.l.bf16 %v3784_v42  ;;  %v2241_v20 = vsel %vm2224_vm10, %v2208_v13, %v3335_v24 }
 0x266   : > { %v2075_v16 = vsel %vm2060_vm6, %v2042_v44, %v3720_v3  ;;  %v2076_v12 = vsel %vm2060_vm6, %v2043_v43, %v3721_v27  ;;  %v5124_v22 = vpop.permute.xlu1 %3803  ;;  %v3789_v17 = vpop.permute.xlu0 %3788  ;;  %v2242_v27 = vsel %vm2224_vm10, %v2209_v23, %v3336_v62  ;;  %v3381_v29 = vunpack.i.h.bf16 %v5541_v9 }
 0x267   : > { %v2107_v37 = vsel %vm361_vm0, %v2075_v16, %v3725_v56  ;;  %v2108_v53 = vsel %vm361_vm0, %v2076_v12, %v3726_v34  ;;  %v3791_v5 = vunpack.i.h.bf16 %v3789_v17  ;;  %v3790_v15 = vunpack.i.l.bf16 %v3789_v17 }
 0x268   : > { %v2140_v10 = vsel %vm2125_vm7, %v2107_v37, %v3730_v4  ;;  %v2141_v18 = vsel %vm2125_vm7, %v2108_v53, %v3731_v55  ;;  %v3386_v60 = vunpack.i.h.bf16 %v5545_v1  ;;  %v3385_v24 = vunpack.i.l.bf16 %v5545_v1 }
 0x269   : > { %v2173_v14 = vsel %vm2158_vm8, %v2140_v10, %v3375_v11  ;;  %v2174_v40 = vsel %vm2158_vm8, %v2141_v18, %v3376_v46  ;;  %v3735_v62 = vunpack.i.l.bf16 %v5053_v0  ;;  %v2073_v39 = vsel %vm2060_vm6, %v4943_v41, %v3785_v51 }
 0x26a   : > { %v5146_v63 = vpop.permute.xlu1 %3813  ;;  %v2074_v36 = vsel %vm2060_vm6, %v4940_v58, %v3786_v32  ;;  %v3794_v11 = vpop.permute.xlu0 %3793  ;;  %v2206_v46 = vsel %vm2191_vm9, %v2173_v14, %v3380_v54  ;;  %v2207_v50 = vsel %vm2191_vm9, %v2174_v40, %v3381_v29  ;;  %v2265_v61 = vpack.c.bf16 %v2242_v27, %v2241_v20 }
 0x26b   : > { %v3796_v3 = vunpack.i.h.bf16 %v3794_v11  ;;  %v3795_v8 = vunpack.i.l.bf16 %v3794_v11  ;;  %v3741_v42 = vunpack.i.h.bf16 %v5061_v28  ;;  %v3740_v0 = vunpack.i.l.bf16 %v5061_v28 }
 0x26c   : > { %v2105_v34 = vsel %vm361_vm0, %v2073_v39, %v3790_v15  ;;  %v2106_v41 = vsel %vm361_vm0, %v2074_v36, %v3791_v5  ;;  %v3746_v58 = vunpack.i.h.bf16 %v5066_v48  ;;  %v3745_v56 = vunpack.i.l.bf16 %v5066_v48 }
 0x26d   : > { %v2138_v9 = vsel %vm2125_vm7, %v2105_v34, %v3795_v8  ;;  %v2139_v54 = vsel %vm2125_vm7, %v2106_v41, %v3796_v3  ;;  %v2239_v28 = vsel %vm2224_vm10, %v2206_v46, %v3385_v24  ;;  %v2240_v44 = vsel %vm2224_vm10, %v2207_v50, %v3386_v60  ;;  %v711_v24 = vld [vmem:[#allocation2 + $0x158] sm:$0xff] }
 0x26e   : > { %v5165_v45 = vpop.permute.xlu1 %3818  ;;  %v2171_v7 = vsel %vm2158_vm8, %v2138_v9, %v3735_v62  ;;  %v2172_v49 = vsel %vm2158_vm8, %v2139_v54, %v3736_v26  ;;  %v2264_v17 = vpack.c.bf16 %v2240_v44, %v2239_v28  ;;  %v3806_v5 = vunpack.i.h.bf16 %v5124_v22 }
 0x26f   : > { %v3799_v25 = vpop.permute.xlu0 %3798  ;;  %v2204_v23 = vsel %vm2191_vm9, %v2171_v7, %v3740_v0  ;;  %v2205_v48 = vsel %vm2191_vm9, %v2172_v49, %v3741_v42  ;;  %v3805_v14 = vunpack.i.l.bf16 %v5124_v22  ;;  %v3815_v46 = vunpack.i.l.bf16 %v5146_v63 }
 0x270   : > { %v3801_v43 = vunpack.i.h.bf16 %v3799_v25  ;;  %v3800_v13 = vunpack.i.l.bf16 %v3799_v25  ;;  %v2237_v55 = vsel %vm2224_vm10, %v2204_v23, %v3745_v56  ;;  %v2238_v4 = vsel %vm2224_vm10, %v2205_v48, %v3746_v58  ;;  %v3905_v23 = vld [vmem:[#allocation2 + $0x168] sm:$0xff] }
 0x271   : > { %v2263_v53 = vpack.c.bf16 %v2238_v4, %v2237_v55  ;;  %v2024_v22 = vsel %vm603_vm2, %v711_v24, %v3806_v5  ;;  %v3821_v50 = vunpack.i.h.bf16 %v5165_v45 }
 0x272   : > { %v2249_v16 = vsel %vm2224_vm10, %v5056_v21, %v3800_v13  ;;  %v2250_v12 = vsel %vm2224_vm10, %v5059_v38, %v3801_v43  ;;  %v5179_v37 = vpop.permute.xlu1 %3823 }
 0x273   : > { %v2269_v32 = vpack.c.bf16 %v2250_v12, %v2249_v16  ;;  %v3809_v51 = vpop.permute.xlu0 %3808  ;;  %3141 = vmatprep.mubr.msk.bf16.mxu1 %vm2300_vm11, %v2263_v53  ;;  %v3826_v34 = vunpack.i.h.bf16 %v5179_v37  ;;  %v3825_v41 = vunpack.i.l.bf16 %v5179_v37 }
 0x274   : > { %3142 = vmatmul.mubr.msk.bf16.gmra.mrb[28].mxu1 %vm2300_vm11, %v2264_v17  ;;  %v3811_v26 = vunpack.i.h.bf16 %v3809_v51  ;;  %v3810_v62 = vunpack.i.l.bf16 %v3809_v51 }
 0x275   : > { %3145 = vmatprep.mubr.msk.bf16.mxu1 %vm2300_vm11, %v2265_v61  ;;  %v3820_v61 = vunpack.i.l.bf16 %v5165_v45 }
 0x276   : > { %v5184_v10 = vpop.permute.xlu1 %3833  ;;  %v2057_v58 = vsel %vm2027_vm5, %v2024_v22, %v3811_v26 }
 0x277   : > { %v5186_v18 = vpop.permute.xlu0 %3828  ;;  %v3835_v9 = vunpack.i.l.bf16 %v5184_v10 }
 0x278   : > { %v3831_v49 = vunpack.i.h.bf16 %v5186_v18  ;;  %v3830_v25 = vunpack.i.l.bf16 %v5186_v18 }
 0x27a   : > { %v3844_v21 = vpop.permute.xlu1 %3843 }
 0x27b   : > { %v5188_v20 = vpop.permute.xlu0 %3838  ;;  %v3846_v38 = vunpack.i.h.bf16 %v3844_v21  ;;  %v3845_v27 = vunpack.i.l.bf16 %v3844_v21 }
 0x27c   : > { %3146 = vmatmul.mubr.msk.bf16.gmra.mrb[32].mxu1 %vm2300_vm11, %v2266_v57  ;;  %v3841_v35 = vunpack.i.h.bf16 %v5188_v20  ;;  %v3840_v59 = vunpack.i.l.bf16 %v5188_v20 }
 0x27d   : > { %3149 = vmatprep.mubr.msk.bf16.mxu1 %vm2300_vm11, %v2267_v19  ;;  %v2185_v60 = vsel %vm2158_vm8, %v5030_v6, %v3845_v27  ;;  %v2186_v31 = vsel %vm2158_vm8, %v5033_v52, %v3846_v38  ;;  %v710_v19 = vld [vmem:[#allocation2 + $0x150] sm:$0xff]  ;;  %v3816_v52 = vunpack.i.h.bf16 %v5146_v63  ;;  %v3836_v63 = vunpack.i.h.bf16 %v5184_v10 }
 0x27e   : > { %v3849_v15 = vpop.permute.xlu1 %3848  ;;  %v2023_v11 = vsel %vm603_vm2, %v710_v19, %v3805_v14 }
 0x27f   : > { %v3851_v40 = vunpack.i.h.bf16 %v3849_v15  ;;  %v3850_v29 = vunpack.i.l.bf16 %v3849_v15  ;;  %v3854_v1 = vpop.permute.xlu0 %3853  ;;  %v2056_v56 = vsel %vm2027_vm5, %v2023_v11, %v3810_v62 }
 0x280   : > { %v3856_v47 = vunpack.i.h.bf16 %v3854_v1  ;;  %v3855_v57 = vunpack.i.l.bf16 %v3854_v1 }
 0x281   : > { %v2218_v33 = vsel %vm2191_vm9, %v2185_v60, %v3850_v29  ;;  %v2219_v30 = vsel %vm2191_vm9, %v2186_v31, %v3851_v40 }
 0x282   : > { %v2252_v39 = vsel %vm2224_vm10, %v2219_v30, %v3856_v47  ;;  %v2251_v36 = vsel %vm2224_vm10, %v2218_v33, %v3855_v57  ;;  %v3859_v6 = vpop.permute.xlu1 %3858 }
 0x283   : > { %v2270_v3 = vpack.c.bf16 %v2252_v39, %v2251_v36  ;;  %v3874_v8 = vpop.permute.xlu0 %3873  ;;  %v3861_v42 = vunpack.i.h.bf16 %v3859_v6  ;;  %v3860_v0 = vunpack.i.l.bf16 %v3859_v6 }
 0x284   : > { %3150 = vmatmul.mubr.msk.bf16.gmra.mrb[36].mxu1 %vm2300_vm11, %v2268_v2  ;;  %v3876_v54 = vunpack.i.h.bf16 %v3874_v8  ;;  %v3875_v45 = vunpack.i.l.bf16 %v3874_v8  ;;  %v3904_v2 = vld [vmem:[#allocation2 + $0x170] sm:$0xff] }
 0x285   : > { %3153 = vmatprep.mubr.msk.bf16.mxu1 %vm2300_vm11, %v2269_v32  ;;  %v2026_v13 = vsel %vm603_vm2, %v3904_v2, %v3861_v42  ;;  %v2025_v48 = vsel %vm603_vm2, %v3905_v23, %v3860_v0  ;;  %v5263_v42 = vld [vmem:[%s5507_s5] ss:$0 sm:$0xff] }
 0x286   : > { %v3864_v7 = vpop.permute.xlu1 %3863  ;;  %v2089_v37 = vsel %vm2060_vm6, %v2056_v56, %v3875_v45  ;;  %v2090_v53 = vsel %vm2060_vm6, %v2057_v58, %v3876_v54 }
 0x287   : > { %v3866_v28 = vunpack.i.h.bf16 %v3864_v7  ;;  %v3865_v44 = vunpack.i.l.bf16 %v3864_v7  ;;  %v3879_v43 = vpop.permute.xlu0 %3878 }
 0x288   : > { %v3881_v16 = vunpack.i.h.bf16 %v3879_v43  ;;  %v3880_v12 = vunpack.i.l.bf16 %v3879_v43 }
 0x289   : > { %v2058_v55 = vsel %vm2027_vm5, %v2025_v48, %v3865_v44  ;;  %v2059_v4 = vsel %vm2027_vm5, %v2026_v13, %v3866_v28 }
 0x28a   : > { %v2091_v32 = vsel %vm2060_vm6, %v2058_v55, %v3815_v46  ;;  %v2092_v51 = vsel %vm2060_vm6, %v2059_v4, %v3816_v52  ;;  %v3869_v17 = vpop.permute.xlu1 %3868  ;;  %v2121_v40 = vsel %vm361_vm0, %v2089_v37, %v3880_v12  ;;  %v2122_v29 = vsel %vm361_vm0, %v2090_v53, %v3881_v16 }
 0x28b   : > { %v2123_v10 = vsel %vm361_vm0, %v2091_v32, %v3820_v61  ;;  %v2124_v18 = vsel %vm361_vm0, %v2092_v51, %v3821_v50  ;;  %v3871_v21 = vunpack.i.h.bf16 %v3869_v17  ;;  %v3870_v20 = vunpack.i.l.bf16 %v3869_v17  ;;  %v3884_v38 = vpop.permute.xlu0 %3883 }
 0x28c   : > { %v2156_v27 = vsel %vm2125_vm7, %v2123_v10, %v3825_v41  ;;  %v2157_v5 = vsel %vm2125_vm7, %v2124_v18, %v3826_v34  ;;  %v3886_v15 = vunpack.i.h.bf16 %v3884_v38  ;;  %v3885_v14 = vunpack.i.l.bf16 %v3884_v38  ;;  %3154 = vmatmul.mubr.msk.bf16.gmra.mrb[40].mxu1 %vm2300_vm11, %v2270_v3 }
 0x28d   : > { %v2189_v1 = vsel %vm2158_vm8, %v2156_v27, %v3835_v9  ;;  %v2190_v60 = vsel %vm2158_vm8, %v2157_v5, %v3836_v63 }
 0x28e   : > { %v2222_v31 = vsel %vm2191_vm9, %v2189_v1, %v3870_v20  ;;  %v2223_v47 = vsel %vm2191_vm9, %v2190_v60, %v3871_v21  ;;  %v2154_v57 = vsel %vm2125_vm7, %v2121_v40, %v3885_v14  ;;  %v2155_v24 = vsel %vm2125_vm7, %v2122_v29, %v3886_v15  ;;  %v3894_v26 = vpop.permute.xlu1 %3893 }
 0x28f   : > { %v2187_v62 = vsel %vm2158_vm8, %v2154_v57, %v3830_v25  ;;  %v2188_v33 = vsel %vm2158_vm8, %v2155_v24, %v3831_v49  ;;  %v3896_v30 = vunpack.i.h.bf16 %v3894_v26  ;;  %v3895_v19 = vunpack.i.l.bf16 %v3894_v26  ;;  %v3889_v22 = vpop.permute.xlu0 %3888 }
 0x290   : > { %v3891_v39 = vunpack.i.h.bf16 %v3889_v22  ;;  %v3890_v36 = vunpack.i.l.bf16 %v3889_v22  ;;  %v2220_v6 = vsel %vm2191_vm9, %v2187_v62, %v3840_v59  ;;  %v2221_v11 = vsel %vm2191_vm9, %v2188_v33, %v3841_v35 }
 0x291   : > { %v2255_v52 = vsel %vm2224_vm10, %v2222_v31, %v3895_v19  ;;  %v2256_v46 = vsel %vm2224_vm10, %v2223_v47, %v3896_v30 }
 0x292   : > { %v2272_v3 = vpack.c.bf16 %v2256_v46, %v2255_v52  ;;  %v2253_v8 = vsel %vm2224_vm10, %v2220_v6, %v3890_v36  ;;  %v2254_v50 = vsel %vm2224_vm10, %v2221_v11, %v3891_v39 }
 0x293   : > { %v2271_v61 = vpack.c.bf16 %v2254_v50, %v2253_v8 }
 0x295   : > { %3157 = vmatprep.mubr.msk.bf16.mxu1 %vm2300_vm11, %v2271_v61 }
 0x296   : > { %3158 = vmatmul.mubr.msk.bf16.gmra.mrb[44].mxu1 %vm2300_vm11, %v2272_v3 }
 0x2cf   : > { %v3131_v0 = vpop.f32.mrb[16].mxu1 }
 0x2d0   : > { %v2396_v34 = vadd.f32 %v3131_v0, %v5263_v42  ;;  %v2387_v41 = vpop.f32.mrb[17].mxu1 }
 0x2d1   : > { %v2388_v58 = vadd.f32 %v5263_v42, %v2387_v41  ;;  %v3132_v56 = vpop.f32.mrb[18].mxu1 }
 0x2d2   : > { %v2399_v63 = vadd.f32 %v3132_v56, %v5263_v42  ;;  %v2390_v9 = vpop.f32.mrb[19].mxu1  ;;  %v2516_v45 = vmax.f32 %v2396_v34, 0.0 }
 0x2d3   : > { %v2391_v54 = vadd.f32 %v5263_v42, %v2390_v9  ;;  %v2514_v49 = vmax.f32 %v2388_v58, 0.0 }
 0x2d4   : > { %v2517_v7 = vmax.f32 %v2399_v63, 0.0 }
 0x2d5   : > { %v2515_v25 = vmax.f32 %v2391_v54, 0.0 }
 0x2d6   : > { %v2547_v28 = vpack.c.bf16 %v2517_v7, %v2516_v45 }
 0x2d7   : > { %v2546_v44 = vpack.c.bf16 %v2515_v25, %v2514_v49 }
 0x2d9   : > { %3163 = vmatprep.mubr.msk.bf16.mxu0 %vm603_vm2, %v2546_v44 }
 0x2da   : > { %3164 = vmatmul.mubr.msk.bf16.vlgmr.msra.gmra.mrb[16].mxu0 %vm603_vm2, %v2547_v28 }
 0x307   : > { %v3135_v43 = vpop.f32.mrb[20].mxu1 }
 0x308   : > { %v2412_v35 = vadd.f32 %v3135_v43, %v5263_v42  ;;  %v2403_v59 = vpop.f32.mrb[21].mxu1 }
 0x309   : > { %v2404_v2 = vadd.f32 %v5263_v42, %v2403_v59  ;;  %v3136_v13 = vpop.f32.mrb[22].mxu1 }
 0x30a   : > { %v2415_v23 = vadd.f32 %v3136_v13, %v5263_v42  ;;  %v2406_v48 = vpop.f32.mrb[23].mxu1  ;;  %v2520_v4 = vmax.f32 %v2412_v35, 0.0 }
 0x30b   : > { %v2407_v55 = vadd.f32 %v5263_v42, %v2406_v48  ;;  %v2518_v12 = vmax.f32 %v2404_v2, 0.0 }
 0x30c   : > { %v2521_v16 = vmax.f32 %v2415_v23, 0.0 }
 0x30d   : > { %v2519_v37 = vmax.f32 %v2407_v55, 0.0 }
 0x30e   : > { %v2549_v53 = vpack.c.bf16 %v2521_v16, %v2520_v4 }
 0x30f   : > { %v2548_v32 = vpack.c.bf16 %v2519_v37, %v2518_v12 }
 0x311   : > { %3167 = vmatprep.mubr.msk.bf16.mxu0 %vm603_vm2, %v2548_v32 }
 0x312   : > { %3168 = vmatmul.mubr.msk.bf16.gmra.mrb[20].mxu0 %vm603_vm2, %v2549_v53 }
 0x338   : > { %v3139_v51 = vpop.f32.mrb[24].mxu1 }
 0x339   : > { %v2428_v17 = vadd.f32 %v3139_v51, %v5263_v42  ;;  %v2419_v10 = vpop.f32.mrb[25].mxu1 }
 0x33a   : > { %v2420_v18 = vadd.f32 %v5263_v42, %v2419_v10  ;;  %v3140_v21 = vpop.f32.mrb[26].mxu1 }
 0x33b   : > { %v2431_v20 = vadd.f32 %v3140_v21, %v5263_v42  ;;  %v2422_v38 = vpop.f32.mrb[27].mxu1  ;;  %v2524_v5 = vmax.f32 %v2428_v17, 0.0 }
 0x33c   : > { %v2423_v27 = vadd.f32 %v5263_v42, %v2422_v38  ;;  %v2522_v14 = vmax.f32 %v2420_v18, 0.0 }
 0x33d   : > { %v2525_v15 = vmax.f32 %v2431_v20, 0.0 }
 0x33e   : > { %v2523_v40 = vmax.f32 %v2423_v27, 0.0 }
 0x33f   : > { %v2551_v29 = vpack.c.bf16 %v2525_v15, %v2524_v5 }
 0x340   : > { %v2550_v1 = vpack.c.bf16 %v2523_v40, %v2522_v14 }
 0x342   : > { %3171 = vmatprep.mubr.msk.bf16.mxu0 %vm603_vm2, %v2550_v1 }
 0x343   : > { %3172 = vmatmul.mubr.msk.bf16.gmra.mrb[24].mxu0 %vm603_vm2, %v2551_v29 }
 0x347   : > { %v3143_v60 = vpop.f32.mrb[28].mxu1 }
 0x348   : > { %v2444_v31 = vadd.f32 %v3143_v60, %v5263_v42  ;;  %v2435_v47 = vpop.f32.mrb[29].mxu1 }
 0x349   : > { %v2436_v57 = vadd.f32 %v5263_v42, %v2435_v47  ;;  %v3144_v24 = vpop.f32.mrb[30].mxu1 }
 0x34a   : > { %v2447_v26 = vadd.f32 %v3144_v24, %v5263_v42  ;;  %v2438_v62 = vpop.f32.mrb[31].mxu1  ;;  %v2528_v30 = vmax.f32 %v2444_v31, 0.0 }
 0x34b   : > { %v2439_v33 = vadd.f32 %v5263_v42, %v2438_v62  ;;  %v2526_v22 = vmax.f32 %v2436_v57, 0.0 }
 0x34c   : > { %v2529_v19 = vmax.f32 %v2447_v26, 0.0 }
 0x34d   : > { %v2527_v39 = vmax.f32 %v2439_v33, 0.0  ;;  %v5316_v33 = vld [vmem:[%s5508_s6] ss:$0 sm:$0xff] }
 0x34e   : > { %v2553_v36 = vpack.c.bf16 %v2529_v19, %v2528_v30 }
 0x34f   : > { %v2552_v6 = vpack.c.bf16 %v2527_v39, %v2526_v22  ;;  %v3147_v11 = vpop.f32.mrb[32].mxu1 }
 0x350   : > { %v2460_v52 = vadd.f32 %v3147_v11, %v5263_v42  ;;  %v2451_v46 = vpop.f32.mrb[33].mxu1 }
 0x351   : > { %v2452_v3 = vadd.f32 %v5263_v42, %v2451_v46  ;;  %v3148_v8 = vpop.f32.mrb[34].mxu1  ;;  %3175 = vmatprep.mubr.msk.bf16.mxu0 %vm603_vm2, %v2552_v6  ;;  %v3907_v46 = vld [vmem:[%s4200_s15] sm:$0xff] }
 0x352   : > { %v2463_v50 = vadd.f32 %v3148_v8, %v5263_v42  ;;  %v2454_v61 = vpop.f32.mrb[35].mxu1  ;;  %3176 = vmatmul.mubr.msk.bf16.gmra.mrb[28].mxu0 %vm603_vm2, %v2553_v36  ;;  %v2532_v34 = vmax.f32 %v2460_v52, 0.0  ;;  %v3906_v36 = vld [vmem:[%s4200_s15 + $0x10] sm:$0xff] }
 0x353   : > { %v2455_v0 = vadd.f32 %v5263_v42, %v2454_v61  ;;  %v2530_v58 = vmax.f32 %v2452_v3, 0.0  ;;  %v3908_v61 = vld [vmem:[%s4200_s15 + $0x18] sm:$0xff] }
 0x354   : > { %v2533_v41 = vmax.f32 %v2463_v50, 0.0 }
 0x355   : > { %v2531_v56 = vmax.f32 %v2455_v0, 0.0 }
 0x356   : > { %v2555_v63 = vpack.c.bf16 %v2533_v41, %v2532_v34  ;;  %v3909_v41 = vld [vmem:[%s4200_s15 + $0x8] sm:$0xff] }
 0x357   : > { %v2554_v9 = vpack.c.bf16 %v2531_v56, %v2530_v58  ;;  %v3151_v54 = vpop.f32.mrb[36].mxu1 }
 0x358   : > { %v2476_v45 = vadd.f32 %v3151_v54, %v5263_v42  ;;  %v2467_v7 = vpop.f32.mrb[37].mxu1 }
 0x359   : > { %v2468_v49 = vadd.f32 %v5263_v42, %v2467_v7  ;;  %v3152_v25 = vpop.f32.mrb[38].mxu1  ;;  %3179 = vmatprep.mubr.msk.bf16.mxu0 %vm603_vm2, %v2554_v9 }
 0x35a   : > { %v2479_v28 = vadd.f32 %v3152_v25, %v5263_v42  ;;  %v2470_v44 = vpop.f32.mrb[39].mxu1  ;;  %3180 = vmatmul.mubr.msk.bf16.gmra.mrb[32].mxu0 %vm603_vm2, %v2555_v63  ;;  %v2536_v35 = vmax.f32 %v2476_v45, 0.0  ;;  %v3910_v25 = vld [vmem:[%s4200_s15 + $0x30] sm:$0xff] }
 0x35b   : > { %v2471_v43 = vadd.f32 %v5263_v42, %v2470_v44  ;;  %v2534_v2 = vmax.f32 %v2468_v49, 0.0 }
 0x35c   : > { %v2537_v59 = vmax.f32 %v2479_v28, 0.0 }
 0x35d   : > { %v2535_v13 = vmax.f32 %v2471_v43, 0.0 }
 0x35e   : > { %v2557_v23 = vpack.c.bf16 %v2537_v59, %v2536_v35  ;;  %v3911_v35 = vld [vmem:[%s4200_s15 + $0x20] sm:$0xff] }
 0x35f   : > { %v2556_v48 = vpack.c.bf16 %v2535_v13, %v2534_v2  ;;  %v3155_v55 = vpop.f32.mrb[40].mxu1 }
 0x360   : > { %v2492_v4 = vadd.f32 %v3155_v55, %v5263_v42  ;;  %v2483_v16 = vpop.f32.mrb[41].mxu1 }
 0x361   : > { %v2484_v12 = vadd.f32 %v5263_v42, %v2483_v16  ;;  %v3156_v37 = vpop.f32.mrb[42].mxu1  ;;  %3183 = vmatprep.mubr.msk.bf16.mxu0 %vm603_vm2, %v2556_v48 }
 0x362   : > { %v2495_v53 = vadd.f32 %v3156_v37, %v5263_v42  ;;  %v2486_v32 = vpop.f32.mrb[43].mxu1  ;;  %3184 = vmatmul.mubr.msk.bf16.gmra.mrb[36].mxu0 %vm603_vm2, %v2557_v23  ;;  %v2540_v17 = vmax.f32 %v2492_v4, 0.0  ;;  %v3912_v23 = vld [vmem:[%s4200_s15 + $0x38] sm:$0xff]  ;;  %v3913_v4 = vld [vmem:[%s4200_s15 + $0x28] sm:$0xff] }
 0x363   : > { %v2487_v51 = vadd.f32 %v5263_v42, %v2486_v32  ;;  %v2538_v18 = vmax.f32 %v2484_v12, 0.0 }
 0x364   : > { %v2541_v10 = vmax.f32 %v2495_v53, 0.0 }
 0x365   : > { %v2539_v21 = vmax.f32 %v2487_v51, 0.0 }
 0x366   : > { %v2559_v20 = vpack.c.bf16 %v2541_v10, %v2540_v17 }
 0x367   : > { %v2558_v38 = vpack.c.bf16 %v2539_v21, %v2538_v18  ;;  %v3914_v18 = vld [vmem:[%s4200_s15 + $0x50] sm:$0xff] }
 0x369   : > { %v3159_v27 = vpop.f32.mrb[44].mxu1  ;;  %3187 = vmatprep.mubr.msk.bf16.mxu0 %vm603_vm2, %v2558_v38 }
 0x36a   : > { %v2508_v5 = vadd.f32 %v3159_v27, %v5263_v42  ;;  %v2499_v15 = vpop.f32.mrb[45].mxu1  ;;  %3188 = vmatmul.mubr.msk.bf16.gmra.mrb[40].mxu0 %vm603_vm2, %v2559_v20  ;;  %v3915_v27 = vld [vmem:[%s4200_s15 + $0x40] sm:$0xff] }
 0x36b   : > { %v2500_v14 = vadd.f32 %v5263_v42, %v2499_v15  ;;  %v3160_v40 = vpop.f32.mrb[46].mxu1 }
 0x36c   : > { %v2511_v29 = vadd.f32 %v3160_v40, %v5263_v42  ;;  %v2502_v1 = vpop.f32.mrb[47].mxu1  ;;  %v2544_v31 = vmax.f32 %v2508_v5, 0.0  ;;  %v3916_v40 = vld [vmem:[%s4200_s15 + $0x58] sm:$0xff] }
 0x36d   : > { %v2503_v60 = vadd.f32 %v5263_v42, %v2502_v1  ;;  %v2542_v57 = vmax.f32 %v2500_v14, 0.0 }
 0x36e   : > { %v2545_v47 = vmax.f32 %v2511_v29, 0.0 }
 0x36f   : > { %v2543_v24 = vmax.f32 %v2503_v60, 0.0  ;;  %v3917_v60 = vld [vmem:[%s4200_s15 + $0x48] sm:$0xff] }
 0x370   : > { %v2561_v26 = vpack.c.bf16 %v2545_v47, %v2544_v31 }
 0x371   : > { %v2560_v62 = vpack.c.bf16 %v2543_v24, %v2542_v57 }
 0x373   : > { %3191 = vmatprep.mubr.msk.bf16.mxu0 %vm603_vm2, %v2560_v62 }
 0x374   : > { %3192 = vmatmul.mubr.msk.bf16.gmra.mrb[44].mxu0 %vm603_vm2, %v2561_v26 }
 0x3ad   : > { %v3165_v30 = vpop.f32.mrb[16].mxu0 }
 0x3ae   : > { %v2664_v42 = vadd.f32 %v3165_v30, %v5316_v33  ;;  %v2655_v19 = vpop.f32.mrb[17].mxu0 }
 0x3af   : > { %v2656_v22 = vadd.f32 %v5316_v33, %v2655_v19  ;;  %v3166_v39 = vpop.f32.mrb[18].mxu0  ;;  %v3918_v19 = vld [vmem:[%s4200_s15 + $0x70] sm:$0xff] }
 0x3b0   : > { %v2784_v6 = vadd.f32 %v3906_v36, %v2664_v42  ;;  %v2667_v11 = vadd.f32 %v3166_v39, %v5316_v33  ;;  %v2658_v52 = vpop.f32.mrb[19].mxu0 }
 0x3b1   : > { %v2782_v3 = vadd.f32 %v3907_v46, %v2656_v22  ;;  %v2659_v8 = vadd.f32 %v5316_v33, %v2658_v52 }
 0x3b2   : > { %v2816_v50 = vmax.f32 %v2784_v6, 0.0  ;;  %v2785_v0 = vadd.f32 %v3908_v61, %v2667_v11  ;;  %v3919_v6 = vld [vmem:[%s4200_s15 + $0x60] sm:$0xff]  ;;  %v3921_v61 = vld [vmem:[%s4200_s15 + $0x68] sm:$0xff] }
 0x3b3   : > { %v2814_v34 = vmax.f32 %v2782_v3, 0.0  ;;  %v2783_v58 = vadd.f32 %v3909_v41, %v2659_v8  ;;  %v3920_v3 = vld [vmem:[%s4200_s15 + $0x78] sm:$0xff] }
 0x3b4   : > { %2848 = vst.msk [vmem:[%s5328_s20 + $0x10] sm:$0xff] %vm361_vm0, %v2816_v50  ;;  %v2817_v56 = vmax.f32 %v2785_v0, 0.0 }
 0x3b5   : > { %2846 = vst.msk [vmem:[%s5328_s20] sm:$0xff] %vm361_vm0, %v2814_v34  ;;  %v2815_v63 = vmax.f32 %v2783_v58, 0.0 }
 0x3b6   : > { %2849 = vst.msk [vmem:[%s5328_s20 + $0x18] sm:$0xff] %vm361_vm0, %v2817_v56 }
 0x3b7   : > { %2847 = vst.msk [vmem:[%s5328_s20 + $0x8] sm:$0xff] %vm361_vm0, %v2815_v63 }
 0x3e5   : > { %v3169_v9 = vpop.f32.mrb[20].mxu0 }
 0x3e6   : > { %v2680_v54 = vadd.f32 %v3169_v9, %v5316_v33  ;;  %v2671_v45 = vpop.f32.mrb[21].mxu0 }
 0x3e7   : > { %v2672_v7 = vadd.f32 %v5316_v33, %v2671_v45  ;;  %v3170_v49 = vpop.f32.mrb[22].mxu0  ;;  %v3922_v45 = vld [vmem:[%s4200_s15 + $0x90] sm:$0xff] }
 0x3e8   : > { %v2788_v28 = vadd.f32 %v3910_v25, %v2680_v54  ;;  %v2683_v44 = vadd.f32 %v3170_v49, %v5316_v33  ;;  %v2674_v43 = vpop.f32.mrb[23].mxu0 }
 0x3e9   : > { %v2786_v59 = vadd.f32 %v3911_v35, %v2672_v7  ;;  %v2675_v2 = vadd.f32 %v5316_v33, %v2674_v43 }
 0x3ea   : > { %v2820_v13 = vmax.f32 %v2788_v28, 0.0  ;;  %v2789_v48 = vadd.f32 %v3912_v23, %v2683_v44  ;;  %v3923_v28 = vld [vmem:[%s4200_s15 + $0x80] sm:$0xff]  ;;  %v3925_v23 = vld [vmem:[%s4200_s15 + $0x88] sm:$0xff] }
 0x3eb   : > { %v2818_v55 = vmax.f32 %v2786_v59, 0.0  ;;  %v2787_v16 = vadd.f32 %v3913_v4, %v2675_v2  ;;  %v3924_v59 = vld [vmem:[%s4200_s15 + $0x98] sm:$0xff] }
 0x3ec   : > { %2852 = vst.msk [vmem:[%s5328_s20 + $0x30] sm:$0xff] %vm361_vm0, %v2820_v13  ;;  %v2821_v12 = vmax.f32 %v2789_v48, 0.0 }
 0x3ed   : > { %2850 = vst.msk [vmem:[%s5328_s20 + $0x20] sm:$0xff] %vm361_vm0, %v2818_v55  ;;  %v2819_v37 = vmax.f32 %v2787_v16, 0.0 }
 0x3ee   : > { %2853 = vst.msk [vmem:[%s5328_s20 + $0x38] sm:$0xff] %vm361_vm0, %v2821_v12 }
 0x3ef   : > { %2851 = vst.msk [vmem:[%s5328_s20 + $0x28] sm:$0xff] %vm361_vm0, %v2819_v37 }
 0x416   : > { %v3173_v53 = vpop.f32.mrb[24].mxu0 }
 0x417   : > { %v2696_v32 = vadd.f32 %v3173_v53, %v5316_v33  ;;  %v2687_v51 = vpop.f32.mrb[25].mxu0 }
 0x418   : > { %v2688_v17 = vadd.f32 %v5316_v33, %v2687_v51  ;;  %v3174_v10 = vpop.f32.mrb[26].mxu0  ;;  %v3926_v51 = vld [vmem:[%s4200_s15 + $0xb0] sm:$0xff] }
 0x419   : > { %v2792_v21 = vadd.f32 %v3914_v18, %v2696_v32  ;;  %v2699_v20 = vadd.f32 %v3174_v10, %v5316_v33  ;;  %v2690_v38 = vpop.f32.mrb[27].mxu0 }
 0x41a   : > { %v2790_v5 = vadd.f32 %v3915_v27, %v2688_v17  ;;  %v2691_v15 = vadd.f32 %v5316_v33, %v2690_v38 }
 0x41b   : > { %v2824_v14 = vmax.f32 %v2792_v21, 0.0  ;;  %v2793_v29 = vadd.f32 %v3916_v40, %v2699_v20  ;;  %v3927_v21 = vld [vmem:[%s4200_s15 + $0xa0] sm:$0xff]  ;;  %v3929_v40 = vld [vmem:[%s4200_s15 + $0xa8] sm:$0xff] }
 0x41c   : > { %v2822_v1 = vmax.f32 %v2790_v5, 0.0  ;;  %v2791_v31 = vadd.f32 %v3917_v60, %v2691_v15  ;;  %v3928_v5 = vld [vmem:[%s4200_s15 + $0xb8] sm:$0xff] }
 0x41d   : > { %2856 = vst.msk [vmem:[%s5328_s20 + $0x50] sm:$0xff] %vm361_vm0, %v2824_v14  ;;  %v2825_v47 = vmax.f32 %v2793_v29, 0.0 }
 0x41e   : > { %2854 = vst.msk [vmem:[%s5328_s20 + $0x40] sm:$0xff] %vm361_vm0, %v2822_v1  ;;  %v2823_v57 = vmax.f32 %v2791_v31, 0.0 }
 0x41f   : > { %2857 = vst.msk [vmem:[%s5328_s20 + $0x58] sm:$0xff] %vm361_vm0, %v2825_v47 }
 0x420   : > { %2855 = vst.msk [vmem:[%s5328_s20 + $0x48] sm:$0xff] %vm361_vm0, %v2823_v57 }
 0x425   : > { %v3177_v24 = vpop.f32.mrb[28].mxu0 }
 0x426   : > { %v2712_v26 = vadd.f32 %v3177_v24, %v5316_v33  ;;  %v2703_v62 = vpop.f32.mrb[29].mxu0 }
 0x427   : > { %v2704_v30 = vadd.f32 %v5316_v33, %v2703_v62  ;;  %v3178_v42 = vpop.f32.mrb[30].mxu0  ;;  %v3930_v62 = vld [vmem:[%s4200_s15 + $0xd0] sm:$0xff] }
 0x428   : > { %v2796_v22 = vadd.f32 %v3918_v19, %v2712_v26  ;;  %v2715_v39 = vadd.f32 %v3178_v42, %v5316_v33  ;;  %v2706_v36 = vpop.f32.mrb[31].mxu0 }
 0x429   : > { %v2794_v11 = vadd.f32 %v3919_v6, %v2704_v30  ;;  %v2707_v52 = vadd.f32 %v5316_v33, %v2706_v36 }
 0x42a   : > { %v2828_v46 = vmax.f32 %v2796_v22, 0.0  ;;  %v2797_v8 = vadd.f32 %v3920_v3, %v2715_v39  ;;  %v3931_v22 = vld [vmem:[%s4200_s15 + $0xc0] sm:$0xff]  ;;  %v3933_v3 = vld [vmem:[%s4200_s15 + $0xc8] sm:$0xff] }
 0x42b   : > { %v2826_v50 = vmax.f32 %v2794_v11, 0.0  ;;  %v2795_v0 = vadd.f32 %v3921_v61, %v2707_v52  ;;  %v3932_v11 = vld [vmem:[%s4200_s15 + $0xd8] sm:$0xff] }
 0x42c   : > { %2860 = vst.msk [vmem:[%s5328_s20 + $0x70] sm:$0xff] %vm361_vm0, %v2828_v46  ;;  %v2829_v34 = vmax.f32 %v2797_v8, 0.0 }
 0x42d   : > { %2858 = vst.msk [vmem:[%s5328_s20 + $0x60] sm:$0xff] %vm361_vm0, %v2826_v50  ;;  %v2827_v41 = vmax.f32 %v2795_v0, 0.0  ;;  %v3181_v58 = vpop.f32.mrb[32].mxu0 }
 0x42e   : > { %2861 = vst.msk [vmem:[%s5328_s20 + $0x78] sm:$0xff] %vm361_vm0, %v2829_v34  ;;  %v2728_v56 = vadd.f32 %v3181_v58, %v5316_v33  ;;  %v2719_v63 = vpop.f32.mrb[33].mxu0 }
 0x42f   : > { %2859 = vst.msk [vmem:[%s5328_s20 + $0x68] sm:$0xff] %vm361_vm0, %v2827_v41  ;;  %v2720_v9 = vadd.f32 %v5316_v33, %v2719_v63  ;;  %v3182_v54 = vpop.f32.mrb[34].mxu0  ;;  %v3934_v63 = vld [vmem:[%s4200_s15 + $0xf0] sm:$0xff] }
 0x430   : > { %v2800_v7 = vadd.f32 %v3922_v45, %v2728_v56  ;;  %v2731_v49 = vadd.f32 %v3182_v54, %v5316_v33  ;;  %v2722_v25 = vpop.f32.mrb[35].mxu0 }
 0x431   : > { %v2798_v44 = vadd.f32 %v3923_v28, %v2720_v9  ;;  %v2723_v43 = vadd.f32 %v5316_v33, %v2722_v25 }
 0x432   : > { %v2832_v35 = vmax.f32 %v2800_v7, 0.0  ;;  %v2801_v2 = vadd.f32 %v3924_v59, %v2731_v49  ;;  %v3935_v7 = vld [vmem:[%s4200_s15 + $0xe0] sm:$0xff]  ;;  %v3937_v59 = vld [vmem:[%s4200_s15 + $0xe8] sm:$0xff] }
 0x433   : > { %v2830_v13 = vmax.f32 %v2798_v44, 0.0  ;;  %v2799_v48 = vadd.f32 %v3925_v23, %v2723_v43  ;;  %v3936_v44 = vld [vmem:[%s4200_s15 + $0xf8] sm:$0xff]  ;;  %s3968_s15 = scalar_lea.vmem %s5453_s22, 4096 }
 0x434   : > { %2864 = vst.msk [vmem:[%s5328_s20 + $0x90] sm:$0xff] %vm361_vm0, %v2832_v35  ;;  %v2833_v55 = vmax.f32 %v2801_v2, 0.0  ;;  %p3969_p6 = scmp.ne.s32.totalorder %s5453_s22, %s3968_s15  ;;  %p3976_p10 = scmp.lt.s32.totalorder %s3974_s8, %s3968_s15 }
 0x435   : > { %2862 = vst.msk [vmem:[%s5328_s20 + $0x80] sm:$0xff] %vm361_vm0, %v2830_v13  ;;  %v2831_v4 = vmax.f32 %v2799_v48, 0.0  ;;  %v3185_v16 = vpop.f32.mrb[36].mxu0 }
 0x436   : > { %2865 = vst.msk [vmem:[%s5328_s20 + $0x98] sm:$0xff] %vm361_vm0, %v2833_v55  ;;  %v2744_v12 = vadd.f32 %v3185_v16, %v5316_v33  ;;  %v2735_v37 = vpop.f32.mrb[37].mxu0  ;;  %p3970_p12 = pnand %p3969_p6, %p5547_p11  ;;  %p3977_p0 = por %p3976_p10, %p3975_p8 }
 0x437   : > { %2863 = vst.msk [vmem:[%s5328_s20 + $0x88] sm:$0xff] %vm361_vm0, %v2831_v4  ;;  %v2736_v53 = vadd.f32 %v5316_v33, %v2735_v37  ;;  %v3186_v32 = vpop.f32.mrb[38].mxu0 }
 0x438   : > { %v2804_v17 = vadd.f32 %v3926_v51, %v2744_v12  ;;  %v2747_v10 = vadd.f32 %v3186_v32, %v5316_v33  ;;  %v2738_v18 = vpop.f32.mrb[39].mxu0  ;;  %p3971_p13 = pneg %p3970_p12 }
 0x439   : > { %v2802_v20 = vadd.f32 %v3927_v21, %v2736_v53  ;;  %v2739_v38 = vadd.f32 %v5316_v33, %v2738_v18 }
 0x43a   : > { %v2836_v27 = vmax.f32 %v2804_v17, 0.0  ;;  %v2805_v15 = vadd.f32 %v3928_v5, %v2747_v10  ;;  %p3978_p2 = pnand %p3977_p0, %p3971_p13 }
 0x43b   : > { %v2834_v14 = vmax.f32 %v2802_v20, 0.0  ;;  %v2803_v29 = vadd.f32 %v3929_v40, %v2739_v38 }
 0x43c   : > { %2868 = vst.msk [vmem:[%s5328_s20 + $0xb0] sm:$0xff] %vm361_vm0, %v2836_v27  ;;  %v2837_v1 = vmax.f32 %v2805_v15, 0.0 }
 0x43d   : > { %2866 = vst.msk [vmem:[%s5328_s20 + $0xa0] sm:$0xff] %vm361_vm0, %v2834_v14  ;;  %v2835_v60 = vmax.f32 %v2803_v29, 0.0  ;;  %v3189_v31 = vpop.f32.mrb[40].mxu0 }
 0x43e   : > { %2869 = vst.msk [vmem:[%s5328_s20 + $0xb8] sm:$0xff] %vm361_vm0, %v2837_v1  ;;  %v2760_v47 = vadd.f32 %v3189_v31, %v5316_v33  ;;  %v2751_v57 = vpop.f32.mrb[41].mxu0 }
 0x43f   : > { %2867 = vst.msk [vmem:[%s5328_s20 + $0xa8] sm:$0xff] %vm361_vm0, %v2835_v60  ;;  %v2752_v24 = vadd.f32 %v5316_v33, %v2751_v57  ;;  %v3190_v26 = vpop.f32.mrb[42].mxu0 }
 0x440   : > { %v2808_v30 = vadd.f32 %v3930_v62, %v2760_v47  ;;  %v2763_v42 = vadd.f32 %v3190_v26, %v5316_v33  ;;  %v2754_v19 = vpop.f32.mrb[43].mxu0 }
 0x441   : > { %v2806_v39 = vadd.f32 %v3931_v22, %v2752_v24  ;;  %v2755_v36 = vadd.f32 %v5316_v33, %v2754_v19 }
 0x442   : > { %v2840_v6 = vmax.f32 %v2808_v30, 0.0  ;;  %v2809_v52 = vadd.f32 %v3932_v11, %v2763_v42 }
 0x443   : > { %v2838_v46 = vmax.f32 %v2806_v39, 0.0  ;;  %v2807_v8 = vadd.f32 %v3933_v3, %v2755_v36 }
 0x444   : > { %2872 = vst.msk [vmem:[%s5328_s20 + $0xd0] sm:$0xff] %vm361_vm0, %v2840_v6  ;;  %v2841_v50 = vmax.f32 %v2809_v52, 0.0 }
 0x445   : > { %2870 = vst.msk [vmem:[%s5328_s20 + $0xc0] sm:$0xff] %vm361_vm0, %v2838_v46  ;;  %v2839_v61 = vmax.f32 %v2807_v8, 0.0 }
 0x446   : > { %2873 = vst.msk [vmem:[%s5328_s20 + $0xd8] sm:$0xff] %vm361_vm0, %v2841_v50 }
 0x447   : > { %v3193_v0 = vpop.f32.mrb[44].mxu0  ;;  %2871 = vst.msk [vmem:[%s5328_s20 + $0xc8] sm:$0xff] %vm361_vm0, %v2839_v61 }
 0x448   : > { %v2776_v34 = vadd.f32 %v3193_v0, %v5316_v33  ;;  %v2767_v41 = vpop.f32.mrb[45].mxu0 }
 0x449   : > { %v2768_v58 = vadd.f32 %v5316_v33, %v2767_v41  ;;  %v3194_v56 = vpop.f32.mrb[46].mxu0 }
 0x44a   : > { %v2812_v9 = vadd.f32 %v3934_v63, %v2776_v34  ;;  %v2779_v54 = vadd.f32 %v3194_v56, %v5316_v33  ;;  %v2770_v45 = vpop.f32.mrb[47].mxu0 }
 0x44b   : > { %v2810_v49 = vadd.f32 %v3935_v7, %v2768_v58  ;;  %v2771_v25 = vadd.f32 %v5316_v33, %v2770_v45 }
 0x44c   : > { %v2844_v28 = vmax.f32 %v2812_v9, 0.0  ;;  %v2813_v43 = vadd.f32 %v3936_v44, %v2779_v54 }
 0x44d   : > { %v2842_v35 = vmax.f32 %v2810_v49, 0.0  ;;  %v2811_v2 = vadd.f32 %v3937_v59, %v2771_v25 }
 0x44e   : > { %2876 = vst.msk [vmem:[%s5328_s20 + $0xf0] sm:$0xff] %vm361_vm0, %v2844_v28  ;;  %v2845_v13 = vmax.f32 %v2813_v43, 0.0 }
 0x44f   : > { %2874 = vst.msk [vmem:[%s5328_s20 + $0xe0] sm:$0xff] %vm361_vm0, %v2842_v35  ;;  %v2843_v33 = vmax.f32 %v2811_v2, 0.0 }
 0x450   : > { %2877 = vst.msk [vmem:[%s5328_s20 + $0xf8] sm:$0xff] %vm361_vm0, %v2845_v13 }
 0x451   : > { %2875 = vst.msk [vmem:[%s5328_s20 + $0xe8] sm:$0xff] %vm361_vm0, %v2843_v33 }
 0x452   : > { %3981 = shalt.err (!%p3978_p2)
}
 0x453   : > { %s3982_s11 = scalar_lea.hbm %s5449_s23, 4096  ;;  %s3986_s19 = scalar_lea.hbm %s5509_s7, 8192 }
 0x454   : > { %p3983_p4 = scmp.ne.s32.totalorder %s5449_s23, %s3982_s11  ;;  %p3987_p9 = scmp.lt.u32.totalorder %s5449_s23, %s5509_s7 }
 0x455   : > { %p3988_p1 = scmp.lt.u32.totalorder %s3986_s19, %s3982_s11  ;;  %p3990_p6 = scmp.lt.u32.totalorder %s3982_s11, %s5449_s23 }
 0x456   : > { %p3984_p5 = pnand %p3983_p4, %p5547_p11 }
 0x457   : > { %p3989_p3 = por %p3988_p1, %p3987_p9 }
 0x458   : > { %p3985_p7 = pneg %p3984_p5 }
 0x459   : > { %p3991_p12 = por %p3990_p6, %p3989_p3 }
 0x45b   : > { %p3992_p13 = pnand %p3991_p12, %p3985_p7 }
 0x45d   : > { %3995 = shalt.err (!%p3992_p13)
}
 0x45e   : > { %s4049_s15 = smov 128  }
 0x45f   : > { %3201 = dma.vmem_to_hbm [thread:$0]  (%p5547_p11), %s5453_s22, 4096, %s5449_s23, %s2879_s28, %s4049_s15, %s4049_s15, %s4040_s12  }
 0x460 PF: > { %s2907_s21 = sand.u32 1, %s4022_s24   ;;  %p5548_p8 = scmp.ne.s32.totalorder %s5524_s14, 0 }
 0x461   : > { %p5549_p10 = scmp.ge.s32.totalorder %s4034_s27, 2  ;;  %s2908_s9 = scalar_lea.sflag [#allocation5], %s2907_s21 }
 0x463   : > { %p3208_p0 = pnand %p5549_p10, %p5548_p8 }
 0x465   : > { %4017 = dma.done.wait (!%p3208_p0), %s2908_s9, 4096  }
 0x466   : > { %4019 = vsyncadd (!%p3208_p0), %s2908_s9, 4294963200  ;;  %p20_p2 = scmp.ge.s32.totalorder %s4115_s30, 4   ;;  %s5550_s24 = smov %s4026_s25 }
 0x467   : > { %s5551_s25 = smov %s4030_s26  ;;  %s5552_s26 = smov %s4127_s10 }
 0x468   : > { %s5553_s27 = smov %s4115_s30  ;;  %22 = sbr.rel (!%p20_p2) target bundleno = 5 (0x5), region = 96 }
 0x46f   :  { %2913 = vsyncpa [#allocation4], 1 }
 0x470   :  { %2915 = vsyncpa [#allocation4 + $0x1], 1 }
 0x471   :  { %2916 = vsyncpa [#allocation5], 1 }
 0x472   :  { %2918 = vsyncpa [#allocation5 + $0x1], 1 }

</bundles_post_ra>
